<compile_context>
chip_gen: v7x
topology: tpu7x:2x2x1
jax: 0.10.0
libtpu: 0.0.40
codegen_flags: <defaults>
</compile_context>

<pallas_src>
import numpy as np
import jax
import jax.numpy as jnp
from jax.experimental import pallas as pl
from jax.experimental.pallas import tpu as pltpu

P = 128  # lane tile width: every in-kernel feature dim must fit in one tile


# ----------------------------- param helpers --------------------------------

def init_params(key, cfg):
    C = cfg["image_dim"][0]
    E = cfg["embed_dim"]
    V = cfg["num_vocab"]
    Fd = cfg["im_feat_dim"]
    L = cfg["num_layers"]
    Hs = cfg["h_dims"]
    Xs = cfg["x_dims"]

    # Static shape guards: everything the kernel touches must live in one
    # 128-lane tile (silently-wrong otherwise).
    assert Xs[0] == E
    assert C <= P and V <= P and E <= P
    for i in range(L):
        assert 4 * Hs[i] <= P, "packed gates need 4*h_dim <= 128"
        in_dim = E if i == 0 else Hs[i - 1]
        assert Hs[i] + in_dim <= P, "packed [h|x] needs h_dim + in_dim <= 128"

    keys = iter(jax.random.split(key, 64))

    def lin(in_dim, out_dim):
        # PyTorch nn.Linear default init: U(-1/sqrt(in), 1/sqrt(in)); W stored (in, out).
        kw, kb = jax.random.split(next(keys))
        bound = float(in_dim) ** -0.5
        w = np.asarray(jax.random.uniform(kw, (in_dim, out_dim), jnp.float32, -bound, bound))
        b = np.asarray(jax.random.uniform(kb, (out_dim,), jnp.float32, -bound, bound))
        return w, b

    # TODO(synk): timm pretrained image backbone replaced by a deterministic
    #             global-average-pool + linear projection stand-in.
    bb_w, bb_b = lin(C, Fd)
    imd_w, imd_b = lin(Fd, E)
    wc_w, wc_b = lin(Xs[-1], V)
    embed = np.asarray(jax.random.normal(next(keys), (V, E), jnp.float32))

    # Raw per-layer params (gate order f, i, o, c — matches reference LSTMCell).
    Wg, Ug, bg, wys, bys = [], [], [], [], []
    for i in range(L):
        H, Xin, Xout = Hs[i], Xs[i], Xs[i + 1]
        W4 = np.zeros((H, 4 * H), np.float32)
        U4 = np.zeros((Xin, 4 * H), np.float32)
        b4 = np.zeros((4 * H,), np.float32)
        for k in range(4):
            w, bw = lin(H, H)       # w*_dense
            u, bu = lin(Xin, H)     # u*_dense
            W4[:, k * H:(k + 1) * H] = w
            U4[:, k * H:(k + 1) * H] = u
            b4[k * H:(k + 1) * H] = bw + bu
        wy, by = lin(H, Xout)       # xh_dense
        Wg.append(W4); Ug.append(U4); bg.append(b4); wys.append(wy); bys.append(by)

    H0 = Hs[0]

    # --- exact algebraic folds ------------------------------------------------
    # Image branch composed into one matmul, output pre-shifted into layer-0's
    # x lanes (H0 : H0+E).
    w_img = np.zeros((P, P), np.float32)
    w_img[:C, H0:H0 + E] = bb_w @ imd_w
    b_img = np.zeros((P,), np.float32)
    b_img[H0:H0 + E] = bb_b @ imd_w + imd_b

    # Embedding table pre-shifted the same way (rows = vocab, cols = x lanes).
    w_emb = np.zeros((P, P), np.float32)
    w_emb[:V, H0:H0 + E] = embed

    # Per-layer fused gate weight packed into a single 128x128 tile:
    #   rows 0:H      -> recurrent block W      (gates packed at cols k*H)
    #   rows H:H+in   -> input block U (for i>0 with wy_{i-1} folded in)
    whx_list, bgate_list = [], []
    for i in range(L):
        H = Hs[i]
        w = np.zeros((P, P), np.float32)
        b = np.zeros((P,), np.float32)
        w[:H, :4 * H] = Wg[i]
        b[:4 * H] = bg[i]
        if i == 0:
            w[H:H + E, :4 * H] = Ug[i]
        else:
            Hp = Hs[i - 1]
            w[H:H + Hp, :4 * H] = wys[i - 1] @ Ug[i]      # fold previous wy
            b[:4 * H] += bys[i - 1] @ Ug[i]               # fold previous by
        whx_list.append(w); bgate_list.append(b)

    # Word classifier with the last layer's output projection folded in.
    # Padded vocab lanes get -1e30 so the in-kernel greedy argmax never selects them.
    w_cls = np.zeros((P, P), np.float32)
    w_cls[:Hs[-1], :V] = wys[-1] @ wc_w
    b_cls = np.full((P,), -1e30, np.float32)
    b_cls[:V] = bys[-1] @ wc_w + wc_b

    # Two slabs -> two entry DMAs instead of ~17 tiny ones.
    w_slab = np.stack([w_img] + whx_list + [w_cls, w_emb], 0)   # (L+3, P, P)
    b_rows = [b_img] + bgate_list + [b_cls]
    b_slab = np.zeros((8, P), np.float32)
    b_slab[:len(b_rows)] = np.stack(b_rows, 0)

    # init_hidden(): kaiming_uniform_ bound sqrt(6/dim), as a scale+mask constant.
    hc_scale = np.zeros((2 * L, 1, P), np.float32)
    for i in range(L):
        bound = (6.0 / Hs[i]) ** 0.5
        hc_scale[i, 0, :Hs[i]] = bound
        hc_scale[L + i, 0, :Hs[i]] = bound

    return {
        "w_slab": jnp.asarray(w_slab, jnp.bfloat16),   # all MXU RHS operands in bf16
        "b_slab": jnp.asarray(b_slab, jnp.float32),
        "hc_scale": jnp.asarray(hc_scale, jnp.float32),
    }


# ------------------------------ fused kernel ---------------------------------

def _make_fused_kernel(cfg, use_tokens, B_pad):
    L = cfg["num_layers"]
    S = cfg["seq_len"]
    Hs = cfg["h_dims"]
    f32, bf16 = jnp.float32, jnp.bfloat16

    def kernel(*refs):
        it = iter(refs)
        pooled_ref = next(it)                      # (B_pad, P) f32
        hc_ref = next(it)                          # (2L, B_pad, P) f32
        tok_ref = next(it) if use_tokens else None # (B_pad, S) i32
        w_ref = next(it)                           # (L+3, P, P) bf16
        b_ref = next(it)                           # (8, P) f32
        out_ref = next(it)                         # (S, B_pad, P) f32

        lane = jax.lax.broadcasted_iota(jnp.int32, (B_pad, P), 1)

        def sigmoid1(x):  # single EUP push (tanh) instead of exp + reciprocal
            return 0.5 * jnp.tanh(0.5 * x) + 0.5

        def cell(i, h, c, x_sh):
            # x_sh already lives in lanes Hs[i]:Hs[i]+in_dim (zeros elsewhere);
            # h is masked to lanes 0:Hs[i]  ->  hx = packed [h | x] row, K = 128.
            H = Hs[i]
            hx = (h + x_sh).astype(bf16)
            g = (jnp.dot(hx, w_ref[1 + i], preferred_element_type=f32)
                 + b_ref[1 + i:2 + i, :])
            s = sigmoid1(g)                        # f/i/o gates at lanes 0:H, H:2H, 2H:3H
            t = jnp.tanh(g)                        # c-hat at lanes 3H:4H
            ft = s
            it_ = pltpu.roll(s, P - H, axis=1)     # realign gates to lanes 0:H (XLU)
            ot = pltpu.roll(s, P - 2 * H, axis=1)
            gt = pltpu.roll(t, P - 3 * H, axis=1)
            c_new = ft * c + it_ * gt              # lanes >= H carry bounded junk, never read
            h_new = jnp.where(lane < H, ot * jnp.tanh(c_new), 0.0)
            return h_new, c_new

        def embed_of(idx):                         # idx: (B_pad, 1) int32
            onehot = (lane == idx).astype(bf16)
            # embedding table is pre-shifted into layer-0's x lanes
            return jnp.dot(onehot, w_ref[2 + L], preferred_element_type=f32)

        hs = [hc_ref[i] for i in range(L)]
        cs = [hc_ref[L + i] for i in range(L)]

        # --- warm-up with the image embedding (backbone + im_dense folded into one dot)
        x_sh = (jnp.dot(pooled_ref[...].astype(bf16), w_ref[0],
                        preferred_element_type=f32) + b_ref[0:1, :])
        for i in range(L):
            if i > 0:
                # layer-(i-1) output projection is folded into whx_i -> just
                # shift h_{i-1} into this layer's x lanes.
                x_sh = pltpu.roll(hs[i - 1], Hs[i], axis=1)
            hs[i], cs[i] = cell(i, hs[i], cs[i], x_sh)

        # --- decode loop (seq_len / num_layers are small & static: fully unrolled)
        if use_tokens:
            x_sh = embed_of(tok_ref[:, 0:1])
        else:
            x_sh = embed_of(jnp.zeros((B_pad, 1), jnp.int32))    # start token = 0

        for j in range(S):
            for i in range(L):
                if i > 0:
                    x_sh = pltpu.roll(hs[i - 1], Hs[i], axis=1)
                hs[i], cs[i] = cell(i, hs[i], cs[i], x_sh)
            # word classifier (last wy folded in); padded vocab lanes biased to -1e30
            logits = (jnp.dot(hs[L - 1].astype(bf16), w_ref[1 + L],
                              preferred_element_type=f32) + b_ref[1 + L:2 + L, :])
            out_ref[j, :, :] = logits              # one unmasked lane-dense vreg store
            if j >= S - 1:
                break
            if use_tokens:
                x_sh = embed_of(tok_ref[:, j + 1:j + 2])
            else:
                # greedy argmax (first max, like torch.argmax) + embedding gather
                m = jnp.max(logits, axis=1, keepdims=True)
                idx = jnp.min(jnp.where(logits == m, lane, P), axis=1, keepdims=True)
                x_sh = embed_of(idx)

    return kernel


# ------------------------------ forward pass ---------------------------------

def lstm_model_forward(params, cfg, images, tokens=None, rng=None):
    B = images.shape[0]
    L = cfg["num_layers"]
    S = cfg["seq_len"]
    V = cfg["num_vocab"]
    B_pad = max(8, -(-B // 8) * 8)

    # init_hidden(): original uses kaiming_uniform_ (random each call); made
    # deterministic with a fixed key unless an rng is supplied.  Single
    # vectorized draw * constant (bound, lane-mask) — no per-layer scatters.
    if rng is None:
        rng = jax.random.PRNGKey(42)
    u = jax.random.uniform(rng, (2 * L, B_pad, P), jnp.float32, -1.0, 1.0)
    hc0 = u * params["hc_scale"]

    # image backbone stand-in: global average pool over spatial (NCHW -> (B, C)),
    # then a single pad to the (B_pad, 128) tile.
    pooled = jnp.mean(images, axis=(2, 3))
    pooled_pad = jnp.pad(pooled, ((0, B_pad - B), (0, P - pooled.shape[1])))

    use_tokens = tokens is not None
    args = [pooled_pad, hc0]
    if use_tokens:
        tok_pad = jnp.pad(tokens.astype(jnp.int32), ((0, B_pad - B), (0, 0)))
        args.append(tok_pad)
    args += [params["w_slab"], params["b_slab"]]

    kernel = _make_fused_kernel(cfg, use_tokens, B_pad)
    out_pad = pl.pallas_call(
        kernel,
        out_shape=jax.ShapeDtypeStruct((S, B_pad, P), jnp.float32),
        in_specs=[pl.BlockSpec(memory_space=pltpu.MemorySpace.VMEM)] * len(args),
        out_specs=pl.BlockSpec(memory_space=pltpu.MemorySpace.VMEM),
    )(*args)

    # strip batch/lane padding -> (B, seq_len, num_vocab)
    return jnp.transpose(out_pad[:, :B, :V], (1, 0, 2))


# ---------------------------------- main --------------------------------------

if __name__ == "__main__":
    cfg = dict(
        seq_len=4,
        num_layers=2,
        h_dims=[32, 32],
        x_dims=[16, 32, 16],     # x_dims[0] == embed_dim
        num_vocab=32,
        embed_dim=16,
        image_dim=[3, 16, 16],
        im_feat_dim=64,
    )
    root = jax.random.PRNGKey(0)
    kp, ki = jax.random.split(root)
    params = init_params(kp, cfg)
    images = jax.random.normal(ki, (2, *cfg["image_dim"]), jnp.float32)  # NCHW

    fwd = jax.jit(lambda imgs: lstm_model_forward(params, cfg, imgs, tokens=None))
    out = jax.block_until_ready(fwd(images))
    assert out.shape == (2, cfg["seq_len"], cfg["num_vocab"]), out.shape
    assert bool(jnp.all(jnp.isfinite(out)))
    print("KERNEL_OK")
</pallas_src>

<mosaic_0001>
module attributes {stable_mosaic.version = 11 : i64} {
  func.func @kernel(%arg0: memref<8x128xf32, #tpu.memory_space<vmem>>, %arg1: memref<4x8x128xf32, #tpu.memory_space<vmem>>, %arg2: memref<5x128x128xbf16, #tpu.memory_space<vmem>>, %arg3: memref<8x128xf32, #tpu.memory_space<vmem>>, %arg4: memref<4x8x128xf32, #tpu.memory_space<vmem>>) attributes {dimension_semantics = [], scalar_prefetch = 0 : i64, scratch_operands = 0 : i64, tpu.core_type = #tpu.core_type<tc>} {
    %0 = tpu.iota {dimensions = array<i32: 1>} : vector<8x128xi32>
    %c0 = arith.constant 0 : index
    %c0_0 = arith.constant 0 : index
    %c0_1 = arith.constant 0 : index
    %1 = vector.load %arg1[%c0, %c0_0, %c0_1] : memref<4x8x128xf32, #tpu.memory_space<vmem>>, vector<1x8x128xf32>
    %2 = vector.shape_cast %1 : vector<1x8x128xf32> to vector<8x128xf32>
    %c1 = arith.constant 1 : index
    %c0_2 = arith.constant 0 : index
    %c0_3 = arith.constant 0 : index
    %3 = vector.load %arg1[%c1, %c0_2, %c0_3] : memref<4x8x128xf32, #tpu.memory_space<vmem>>, vector<1x8x128xf32>
    %4 = vector.shape_cast %3 : vector<1x8x128xf32> to vector<8x128xf32>
    %c2 = arith.constant 2 : index
    %c0_4 = arith.constant 0 : index
    %c0_5 = arith.constant 0 : index
    %5 = vector.load %arg1[%c2, %c0_4, %c0_5] : memref<4x8x128xf32, #tpu.memory_space<vmem>>, vector<1x8x128xf32>
    %6 = vector.shape_cast %5 : vector<1x8x128xf32> to vector<8x128xf32>
    %c3 = arith.constant 3 : index
    %c0_6 = arith.constant 0 : index
    %c0_7 = arith.constant 0 : index
    %7 = vector.load %arg1[%c3, %c0_6, %c0_7] : memref<4x8x128xf32, #tpu.memory_space<vmem>>, vector<1x8x128xf32>
    %8 = vector.shape_cast %7 : vector<1x8x128xf32> to vector<8x128xf32>
    %c0_8 = arith.constant 0 : index
    %c0_9 = arith.constant 0 : index
    %9 = vector.load %arg0[%c0_8, %c0_9] : memref<8x128xf32, #tpu.memory_space<vmem>>, vector<8x128xf32>
    %10 = arith.truncf %9 : vector<8x128xf32> to vector<8x128xbf16>
    %c0_10 = arith.constant 0 : index
    %c0_11 = arith.constant 0 : index
    %c0_12 = arith.constant 0 : index
    %11 = vector.load %arg2[%c0_10, %c0_11, %c0_12] : memref<5x128x128xbf16, #tpu.memory_space<vmem>>, vector<1x128x128xbf16>
    %12 = vector.shape_cast %11 : vector<1x128x128xbf16> to vector<128x128xbf16>
    %cst = arith.constant dense<0.000000e+00> : vector<8x128xf32>
    %13 = tpu.matmul %10, %12, %cst {dimension_numbers = #tpu.dot_dimension_numbers<[1], [0], [0], [1], [0, 0, 1, 1], [], []>} : vector<8x128xbf16>, vector<128x128xbf16>, vector<8x128xf32> -> vector<8x128xf32>
    %c0_13 = arith.constant 0 : index
    %c0_14 = arith.constant 0 : index
    %14 = vector.load %arg3[%c0_13, %c0_14] : memref<8x128xf32, #tpu.memory_space<vmem>>, vector<1x128xf32>
    %15 = vector.broadcast %14 : vector<1x128xf32> to vector<8x128xf32>
    %16 = arith.addf %13, %15 : vector<8x128xf32>
    %17 = arith.addf %2, %16 : vector<8x128xf32>
    %18 = arith.truncf %17 : vector<8x128xf32> to vector<8x128xbf16>
    %c1_15 = arith.constant 1 : index
    %c0_16 = arith.constant 0 : index
    %c0_17 = arith.constant 0 : index
    %19 = vector.load %arg2[%c1_15, %c0_16, %c0_17] : memref<5x128x128xbf16, #tpu.memory_space<vmem>>, vector<1x128x128xbf16>
    %20 = vector.shape_cast %19 : vector<1x128x128xbf16> to vector<128x128xbf16>
    %cst_18 = arith.constant dense<0.000000e+00> : vector<8x128xf32>
    %21 = tpu.matmul %18, %20, %cst_18 {dimension_numbers = #tpu.dot_dimension_numbers<[1], [0], [0], [1], [0, 0, 1, 1], [], []>} : vector<8x128xbf16>, vector<128x128xbf16>, vector<8x128xf32> -> vector<8x128xf32>
    %c1_19 = arith.constant 1 : index
    %c0_20 = arith.constant 0 : index
    %22 = vector.load %arg3[%c1_19, %c0_20] : memref<8x128xf32, #tpu.memory_space<vmem>>, vector<1x128xf32>
    %23 = vector.broadcast %22 : vector<1x128xf32> to vector<8x128xf32>
    %24 = arith.addf %21, %23 : vector<8x128xf32>
    %cst_21 = arith.constant 5.000000e-01 : f32
    %25 = vector.broadcast %cst_21 : f32 to vector<8x128xf32>
    %26 = arith.mulf %25, %24 : vector<8x128xf32>
    %27 = math.tanh %26 : vector<8x128xf32>
    %cst_22 = arith.constant 5.000000e-01 : f32
    %28 = vector.broadcast %cst_22 : f32 to vector<8x128xf32>
    %29 = arith.mulf %28, %27 : vector<8x128xf32>
    %cst_23 = arith.constant 5.000000e-01 : f32
    %30 = vector.broadcast %cst_23 : f32 to vector<8x128xf32>
    %31 = arith.addf %29, %30 : vector<8x128xf32>
    %32 = math.tanh %24 : vector<8x128xf32>
    %c96_i32 = arith.constant 96 : i32
    %33 = tpu.dynamic_rotate %31 by %c96_i32 dim 1 : vector<8x128xf32>, i32 -> vector<8x128xf32>
    %c64_i32 = arith.constant 64 : i32
    %34 = tpu.dynamic_rotate %31 by %c64_i32 dim 1 : vector<8x128xf32>, i32 -> vector<8x128xf32>
    %c32_i32 = arith.constant 32 : i32
    %35 = tpu.dynamic_rotate %32 by %c32_i32 dim 1 : vector<8x128xf32>, i32 -> vector<8x128xf32>
    %36 = arith.mulf %31, %6 : vector<8x128xf32>
    %37 = arith.mulf %33, %35 : vector<8x128xf32>
    %38 = arith.addf %36, %37 : vector<8x128xf32>
    %c32_i32_24 = arith.constant 32 : i32
    %39 = vector.broadcast %c32_i32_24 : i32 to vector<8x128xi32>
    %40 = arith.cmpi slt, %0, %39 : vector<8x128xi32>
    %41 = math.tanh %38 : vector<8x128xf32>
    %42 = arith.mulf %34, %41 : vector<8x128xf32>
    %cst_25 = arith.constant 0.000000e+00 : f32
    %43 = vector.broadcast %cst_25 : f32 to vector<8x128xf32>
    %44 = arith.select %40, %42, %43 : vector<8x128xi1>, vector<8x128xf32>
    %c32_i32_26 = arith.constant 32 : i32
    %45 = tpu.dynamic_rotate %44 by %c32_i32_26 dim 1 : vector<8x128xf32>, i32 -> vector<8x128xf32>
    %46 = arith.addf %4, %45 : vector<8x128xf32>
    %47 = arith.truncf %46 : vector<8x128xf32> to vector<8x128xbf16>
    %c2_27 = arith.constant 2 : index
    %c0_28 = arith.constant 0 : index
    %c0_29 = arith.constant 0 : index
    %48 = vector.load %arg2[%c2_27, %c0_28, %c0_29] : memref<5x128x128xbf16, #tpu.memory_space<vmem>>, vector<1x128x128xbf16>
    %49 = vector.shape_cast %48 : vector<1x128x128xbf16> to vector<128x128xbf16>
    %cst_30 = arith.constant dense<0.000000e+00> : vector<8x128xf32>
    %50 = tpu.matmul %47, %49, %cst_30 {dimension_numbers = #tpu.dot_dimension_numbers<[1], [0], [0], [1], [0, 0, 1, 1], [], []>} : vector<8x128xbf16>, vector<128x128xbf16>, vector<8x128xf32> -> vector<8x128xf32>
    %c2_31 = arith.constant 2 : index
    %c0_32 = arith.constant 0 : index
    %51 = vector.load %arg3[%c2_31, %c0_32] : memref<8x128xf32, #tpu.memory_space<vmem>>, vector<1x128xf32>
    %52 = vector.broadcast %51 : vector<1x128xf32> to vector<8x128xf32>
    %53 = arith.addf %50, %52 : vector<8x128xf32>
    %cst_33 = arith.constant 5.000000e-01 : f32
    %54 = vector.broadcast %cst_33 : f32 to vector<8x128xf32>
    %55 = arith.mulf %54, %53 : vector<8x128xf32>
    %56 = math.tanh %55 : vector<8x128xf32>
    %cst_34 = arith.constant 5.000000e-01 : f32
    %57 = vector.broadcast %cst_34 : f32 to vector<8x128xf32>
    %58 = arith.mulf %57, %56 : vector<8x128xf32>
    %cst_35 = arith.constant 5.000000e-01 : f32
    %59 = vector.broadcast %cst_35 : f32 to vector<8x128xf32>
    %60 = arith.addf %58, %59 : vector<8x128xf32>
    %61 = math.tanh %53 : vector<8x128xf32>
    %c96_i32_36 = arith.constant 96 : i32
    %62 = tpu.dynamic_rotate %60 by %c96_i32_36 dim 1 : vector<8x128xf32>, i32 -> vector<8x128xf32>
    %c64_i32_37 = arith.constant 64 : i32
    %63 = tpu.dynamic_rotate %60 by %c64_i32_37 dim 1 : vector<8x128xf32>, i32 -> vector<8x128xf32>
    %c32_i32_38 = arith.constant 32 : i32
    %64 = tpu.dynamic_rotate %61 by %c32_i32_38 dim 1 : vector<8x128xf32>, i32 -> vector<8x128xf32>
    %65 = arith.mulf %60, %8 : vector<8x128xf32>
    %66 = arith.mulf %62, %64 : vector<8x128xf32>
    %67 = arith.addf %65, %66 : vector<8x128xf32>
    %c32_i32_39 = arith.constant 32 : i32
    %68 = vector.broadcast %c32_i32_39 : i32 to vector<8x128xi32>
    %69 = arith.cmpi slt, %0, %68 : vector<8x128xi32>
    %70 = math.tanh %67 : vector<8x128xf32>
    %71 = arith.mulf %63, %70 : vector<8x128xf32>
    %cst_40 = arith.constant 0.000000e+00 : f32
    %72 = vector.broadcast %cst_40 : f32 to vector<8x128xf32>
    %73 = arith.select %69, %71, %72 : vector<8x128xi1>, vector<8x128xf32>
    %c0_i32 = arith.constant 0 : i32
    %74 = vector.broadcast %c0_i32 : i32 to vector<8x1xi32>
    %75 = vector.broadcast %74 : vector<8x1xi32> to vector<8x128xi32>
    %76 = arith.cmpi eq, %0, %75 : vector<8x128xi32>
    %77 = arith.extui %76 : vector<8x128xi1> to vector<8x128xi32>
    %78 = arith.sitofp %77 : vector<8x128xi32> to vector<8x128xf32>
    %79 = arith.truncf %78 : vector<8x128xf32> to vector<8x128xbf16>
    %c4 = arith.constant 4 : index
    %c0_41 = arith.constant 0 : index
    %c0_42 = arith.constant 0 : index
    %80 = vector.load %arg2[%c4, %c0_41, %c0_42] : memref<5x128x128xbf16, #tpu.memory_space<vmem>>, vector<1x128x128xbf16>
    %81 = vector.shape_cast %80 : vector<1x128x128xbf16> to vector<128x128xbf16>
    %cst_43 = arith.constant dense<0.000000e+00> : vector<8x128xf32>
    %82 = tpu.matmul %79, %81, %cst_43 {dimension_numbers = #tpu.dot_dimension_numbers<[1], [0], [0], [1], [0, 0, 1, 1], [], []>} : vector<8x128xbf16>, vector<128x128xbf16>, vector<8x128xf32> -> vector<8x128xf32>
    %83 = arith.addf %44, %82 : vector<8x128xf32>
    %84 = arith.truncf %83 : vector<8x128xf32> to vector<8x128xbf16>
    %c1_44 = arith.constant 1 : index
    %c0_45 = arith.constant 0 : index
    %c0_46 = arith.constant 0 : index
    %85 = vector.load %arg2[%c1_44, %c0_45, %c0_46] : memref<5x128x128xbf16, #tpu.memory_space<vmem>>, vector<1x128x128xbf16>
    %86 = vector.shape_cast %85 : vector<1x128x128xbf16> to vector<128x128xbf16>
    %cst_47 = arith.constant dense<0.000000e+00> : vector<8x128xf32>
    %87 = tpu.matmul %84, %86, %cst_47 {dimension_numbers = #tpu.dot_dimension_numbers<[1], [0], [0], [1], [0, 0, 1, 1], [], []>} : vector<8x128xbf16>, vector<128x128xbf16>, vector<8x128xf32> -> vector<8x128xf32>
    %c1_48 = arith.constant 1 : index
    %c0_49 = arith.constant 0 : index
    %88 = vector.load %arg3[%c1_48, %c0_49] : memref<8x128xf32, #tpu.memory_space<vmem>>, vector<1x128xf32>
    %89 = vector.broadcast %88 : vector<1x128xf32> to vector<8x128xf32>
    %90 = arith.addf %87, %89 : vector<8x128xf32>
    %cst_50 = arith.constant 5.000000e-01 : f32
    %91 = vector.broadcast %cst_50 : f32 to vector<8x128xf32>
    %92 = arith.mulf %91, %90 : vector<8x128xf32>
    %93 = math.tanh %92 : vector<8x128xf32>
    %cst_51 = arith.constant 5.000000e-01 : f32
    %94 = vector.broadcast %cst_51 : f32 to vector<8x128xf32>
    %95 = arith.mulf %94, %93 : vector<8x128xf32>
    %cst_52 = arith.constant 5.000000e-01 : f32
    %96 = vector.broadcast %cst_52 : f32 to vector<8x128xf32>
    %97 = arith.addf %95, %96 : vector<8x128xf32>
    %98 = math.tanh %90 : vector<8x128xf32>
    %c96_i32_53 = arith.constant 96 : i32
    %99 = tpu.dynamic_rotate %97 by %c96_i32_53 dim 1 : vector<8x128xf32>, i32 -> vector<8x128xf32>
    %c64_i32_54 = arith.constant 64 : i32
    %100 = tpu.dynamic_rotate %97 by %c64_i32_54 dim 1 : vector<8x128xf32>, i32 -> vector<8x128xf32>
    %c32_i32_55 = arith.constant 32 : i32
    %101 = tpu.dynamic_rotate %98 by %c32_i32_55 dim 1 : vector<8x128xf32>, i32 -> vector<8x128xf32>
    %102 = arith.mulf %97, %38 : vector<8x128xf32>
    %103 = arith.mulf %99, %101 : vector<8x128xf32>
    %104 = arith.addf %102, %103 : vector<8x128xf32>
    %c32_i32_56 = arith.constant 32 : i32
    %105 = vector.broadcast %c32_i32_56 : i32 to vector<8x128xi32>
    %106 = arith.cmpi slt, %0, %105 : vector<8x128xi32>
    %107 = math.tanh %104 : vector<8x128xf32>
    %108 = arith.mulf %100, %107 : vector<8x128xf32>
    %cst_57 = arith.constant 0.000000e+00 : f32
    %109 = vector.broadcast %cst_57 : f32 to vector<8x128xf32>
    %110 = arith.select %106, %108, %109 : vector<8x128xi1>, vector<8x128xf32>
    %c32_i32_58 = arith.constant 32 : i32
    %111 = tpu.dynamic_rotate %110 by %c32_i32_58 dim 1 : vector<8x128xf32>, i32 -> vector<8x128xf32>
    %112 = arith.addf %73, %111 : vector<8x128xf32>
    %113 = arith.truncf %112 : vector<8x128xf32> to vector<8x128xbf16>
    %c2_59 = arith.constant 2 : index
    %c0_60 = arith.constant 0 : index
    %c0_61 = arith.constant 0 : index
    %114 = vector.load %arg2[%c2_59, %c0_60, %c0_61] : memref<5x128x128xbf16, #tpu.memory_space<vmem>>, vector<1x128x128xbf16>
    %115 = vector.shape_cast %114 : vector<1x128x128xbf16> to vector<128x128xbf16>
    %cst_62 = arith.constant dense<0.000000e+00> : vector<8x128xf32>
    %116 = tpu.matmul %113, %115, %cst_62 {dimension_numbers = #tpu.dot_dimension_numbers<[1], [0], [0], [1], [0, 0, 1, 1], [], []>} : vector<8x128xbf16>, vector<128x128xbf16>, vector<8x128xf32> -> vector<8x128xf32>
    %c2_63 = arith.constant 2 : index
    %c0_64 = arith.constant 0 : index
    %117 = vector.load %arg3[%c2_63, %c0_64] : memref<8x128xf32, #tpu.memory_space<vmem>>, vector<1x128xf32>
    %118 = vector.broadcast %117 : vector<1x128xf32> to vector<8x128xf32>
    %119 = arith.addf %116, %118 : vector<8x128xf32>
    %cst_65 = arith.constant 5.000000e-01 : f32
    %120 = vector.broadcast %cst_65 : f32 to vector<8x128xf32>
    %121 = arith.mulf %120, %119 : vector<8x128xf32>
    %122 = math.tanh %121 : vector<8x128xf32>
    %cst_66 = arith.constant 5.000000e-01 : f32
    %123 = vector.broadcast %cst_66 : f32 to vector<8x128xf32>
    %124 = arith.mulf %123, %122 : vector<8x128xf32>
    %cst_67 = arith.constant 5.000000e-01 : f32
    %125 = vector.broadcast %cst_67 : f32 to vector<8x128xf32>
    %126 = arith.addf %124, %125 : vector<8x128xf32>
    %127 = math.tanh %119 : vector<8x128xf32>
    %c96_i32_68 = arith.constant 96 : i32
    %128 = tpu.dynamic_rotate %126 by %c96_i32_68 dim 1 : vector<8x128xf32>, i32 -> vector<8x128xf32>
    %c64_i32_69 = arith.constant 64 : i32
    %129 = tpu.dynamic_rotate %126 by %c64_i32_69 dim 1 : vector<8x128xf32>, i32 -> vector<8x128xf32>
    %c32_i32_70 = arith.constant 32 : i32
    %130 = tpu.dynamic_rotate %127 by %c32_i32_70 dim 1 : vector<8x128xf32>, i32 -> vector<8x128xf32>
    %131 = arith.mulf %126, %67 : vector<8x128xf32>
    %132 = arith.mulf %128, %130 : vector<8x128xf32>
    %133 = arith.addf %131, %132 : vector<8x128xf32>
    %c32_i32_71 = arith.constant 32 : i32
    %134 = vector.broadcast %c32_i32_71 : i32 to vector<8x128xi32>
    %135 = arith.cmpi slt, %0, %134 : vector<8x128xi32>
    %136 = math.tanh %133 : vector<8x128xf32>
    %137 = arith.mulf %129, %136 : vector<8x128xf32>
    %cst_72 = arith.constant 0.000000e+00 : f32
    %138 = vector.broadcast %cst_72 : f32 to vector<8x128xf32>
    %139 = arith.select %135, %137, %138 : vector<8x128xi1>, vector<8x128xf32>
    %140 = arith.truncf %139 : vector<8x128xf32> to vector<8x128xbf16>
    %c3_73 = arith.constant 3 : index
    %c0_74 = arith.constant 0 : index
    %c0_75 = arith.constant 0 : index
    %141 = vector.load %arg2[%c3_73, %c0_74, %c0_75] : memref<5x128x128xbf16, #tpu.memory_space<vmem>>, vector<1x128x128xbf16>
    %142 = vector.shape_cast %141 : vector<1x128x128xbf16> to vector<128x128xbf16>
    %cst_76 = arith.constant dense<0.000000e+00> : vector<8x128xf32>
    %143 = tpu.matmul %140, %142, %cst_76 {dimension_numbers = #tpu.dot_dimension_numbers<[1], [0], [0], [1], [0, 0, 1, 1], [], []>} : vector<8x128xbf16>, vector<128x128xbf16>, vector<8x128xf32> -> vector<8x128xf32>
    %c3_77 = arith.constant 3 : index
    %c0_78 = arith.constant 0 : index
    %144 = vector.load %arg3[%c3_77, %c0_78] : memref<8x128xf32, #tpu.memory_space<vmem>>, vector<1x128xf32>
    %145 = vector.broadcast %144 : vector<1x128xf32> to vector<8x128xf32>
    %146 = arith.addf %143, %145 : vector<8x128xf32>
    %c0_79 = arith.constant 0 : index
    %c0_80 = arith.constant 0 : index
    %c0_81 = arith.constant 0 : index
    %147 = vector.load %arg4[%c0_79, %c0_80, %c0_81] : memref<4x8x128xf32, #tpu.memory_space<vmem>>, vector<1x8x128xf32>
    %148 = vector.shape_cast %147 : vector<1x8x128xf32> to vector<8x128xf32>
    %149 = vector.shape_cast %146 : vector<8x128xf32> to vector<1x8x128xf32>
    tpu.vector_store %arg4[%c0_79, %c0_80, %c0_81], %149 {strides = array<i32>} : memref<4x8x128xf32, #tpu.memory_space<vmem>>, vector<1x8x128xf32>,
    %cst_82 = arith.constant dense<0xFF800000> : vector<8xf32>
    %150 = vector.multi_reduction <maximumf>, %146, %cst_82 [1] : vector<8x128xf32> to vector<8xf32>
    %151 = vector.shape_cast %150 : vector<8xf32> to vector<8x1xf32>
    %152 = vector.broadcast %151 : vector<8x1xf32> to vector<8x128xf32>
    %153 = arith.cmpf oeq, %146, %152 : vector<8x128xf32>
    %c128_i32 = arith.constant 128 : i32
    %154 = vector.broadcast %c128_i32 : i32 to vector<8x128xi32>
    %155 = arith.select %153, %0, %154 : vector<8x128xi1>, vector<8x128xi32>
    %cst_83 = arith.constant dense<2147483647> : vector<8xi32>
    %156 = vector.multi_reduction <minsi>, %155, %cst_83 [1] : vector<8x128xi32> to vector<8xi32>
    %157 = vector.shape_cast %156 : vector<8xi32> to vector<8x1xi32>
    %158 = vector.broadcast %157 : vector<8x1xi32> to vector<8x128xi32>
    %159 = arith.cmpi eq, %0, %158 : vector<8x128xi32>
    %160 = arith.extui %159 : vector<8x128xi1> to vector<8x128xi32>
    %161 = arith.sitofp %160 : vector<8x128xi32> to vector<8x128xf32>
    %162 = arith.truncf %161 : vector<8x128xf32> to vector<8x128xbf16>
    %c4_84 = arith.constant 4 : index
    %c0_85 = arith.constant 0 : index
    %c0_86 = arith.constant 0 : index
    %163 = vector.load %arg2[%c4_84, %c0_85, %c0_86] : memref<5x128x128xbf16, #tpu.memory_space<vmem>>, vector<1x128x128xbf16>
    %164 = vector.shape_cast %163 : vector<1x128x128xbf16> to vector<128x128xbf16>
    %cst_87 = arith.constant dense<0.000000e+00> : vector<8x128xf32>
    %165 = tpu.matmul %162, %164, %cst_87 {dimension_numbers = #tpu.dot_dimension_numbers<[1], [0], [0], [1], [0, 0, 1, 1], [], []>} : vector<8x128xbf16>, vector<128x128xbf16>, vector<8x128xf32> -> vector<8x128xf32>
    %166 = arith.addf %110, %165 : vector<8x128xf32>
    %167 = arith.truncf %166 : vector<8x128xf32> to vector<8x128xbf16>
    %c1_88 = arith.constant 1 : index
    %c0_89 = arith.constant 0 : index
    %c0_90 = arith.constant 0 : index
    %168 = vector.load %arg2[%c1_88, %c0_89, %c0_90] : memref<5x128x128xbf16, #tpu.memory_space<vmem>>, vector<1x128x128xbf16>
    %169 = vector.shape_cast %168 : vector<1x128x128xbf16> to vector<128x128xbf16>
    %cst_91 = arith.constant dense<0.000000e+00> : vector<8x128xf32>
    %170 = tpu.matmul %167, %169, %cst_91 {dimension_numbers = #tpu.dot_dimension_numbers<[1], [0], [0], [1], [0, 0, 1, 1], [], []>} : vector<8x128xbf16>, vector<128x128xbf16>, vector<8x128xf32> -> vector<8x128xf32>
    %c1_92 = arith.constant 1 : index
    %c0_93 = arith.constant 0 : index
    %171 = vector.load %arg3[%c1_92, %c0_93] : memref<8x128xf32, #tpu.memory_space<vmem>>, vector<1x128xf32>
    %172 = vector.broadcast %171 : vector<1x128xf32> to vector<8x128xf32>
    %173 = arith.addf %170, %172 : vector<8x128xf32>
    %cst_94 = arith.constant 5.000000e-01 : f32
    %174 = vector.broadcast %cst_94 : f32 to vector<8x128xf32>
    %175 = arith.mulf %174, %173 : vector<8x128xf32>
    %176 = math.tanh %175 : vector<8x128xf32>
    %cst_95 = arith.constant 5.000000e-01 : f32
    %177 = vector.broadcast %cst_95 : f32 to vector<8x128xf32>
    %178 = arith.mulf %177, %176 : vector<8x128xf32>
    %cst_96 = arith.constant 5.000000e-01 : f32
    %179 = vector.broadcast %cst_96 : f32 to vector<8x128xf32>
    %180 = arith.addf %178, %179 : vector<8x128xf32>
    %181 = math.tanh %173 : vector<8x128xf32>
    %c96_i32_97 = arith.constant 96 : i32
    %182 = tpu.dynamic_rotate %180 by %c96_i32_97 dim 1 : vector<8x128xf32>, i32 -> vector<8x128xf32>
    %c64_i32_98 = arith.constant 64 : i32
    %183 = tpu.dynamic_rotate %180 by %c64_i32_98 dim 1 : vector<8x128xf32>, i32 -> vector<8x128xf32>
    %c32_i32_99 = arith.constant 32 : i32
    %184 = tpu.dynamic_rotate %181 by %c32_i32_99 dim 1 : vector<8x128xf32>, i32 -> vector<8x128xf32>
    %185 = arith.mulf %180, %104 : vector<8x128xf32>
    %186 = arith.mulf %182, %184 : vector<8x128xf32>
    %187 = arith.addf %185, %186 : vector<8x128xf32>
    %c32_i32_100 = arith.constant 32 : i32
    %188 = vector.broadcast %c32_i32_100 : i32 to vector<8x128xi32>
    %189 = arith.cmpi slt, %0, %188 : vector<8x128xi32>
    %190 = math.tanh %187 : vector<8x128xf32>
    %191 = arith.mulf %183, %190 : vector<8x128xf32>
    %cst_101 = arith.constant 0.000000e+00 : f32
    %192 = vector.broadcast %cst_101 : f32 to vector<8x128xf32>
    %193 = arith.select %189, %191, %192 : vector<8x128xi1>, vector<8x128xf32>
    %c32_i32_102 = arith.constant 32 : i32
    %194 = tpu.dynamic_rotate %193 by %c32_i32_102 dim 1 : vector<8x128xf32>, i32 -> vector<8x128xf32>
    %195 = arith.addf %139, %194 : vector<8x128xf32>
    %196 = arith.truncf %195 : vector<8x128xf32> to vector<8x128xbf16>
    %c2_103 = arith.constant 2 : index
    %c0_104 = arith.constant 0 : index
    %c0_105 = arith.constant 0 : index
    %197 = vector.load %arg2[%c2_103, %c0_104, %c0_105] : memref<5x128x128xbf16, #tpu.memory_space<vmem>>, vector<1x128x128xbf16>
    %198 = vector.shape_cast %197 : vector<1x128x128xbf16> to vector<128x128xbf16>
    %cst_106 = arith.constant dense<0.000000e+00> : vector<8x128xf32>
    %199 = tpu.matmul %196, %198, %cst_106 {dimension_numbers = #tpu.dot_dimension_numbers<[1], [0], [0], [1], [0, 0, 1, 1], [], []>} : vector<8x128xbf16>, vector<128x128xbf16>, vector<8x128xf32> -> vector<8x128xf32>
    %c2_107 = arith.constant 2 : index
    %c0_108 = arith.constant 0 : index
    %200 = vector.load %arg3[%c2_107, %c0_108] : memref<8x128xf32, #tpu.memory_space<vmem>>, vector<1x128xf32>
    %201 = vector.broadcast %200 : vector<1x128xf32> to vector<8x128xf32>
    %202 = arith.addf %199, %201 : vector<8x128xf32>
    %cst_109 = arith.constant 5.000000e-01 : f32
    %203 = vector.broadcast %cst_109 : f32 to vector<8x128xf32>
    %204 = arith.mulf %203, %202 : vector<8x128xf32>
    %205 = math.tanh %204 : vector<8x128xf32>
    %cst_110 = arith.constant 5.000000e-01 : f32
    %206 = vector.broadcast %cst_110 : f32 to vector<8x128xf32>
    %207 = arith.mulf %206, %205 : vector<8x128xf32>
    %cst_111 = arith.constant 5.000000e-01 : f32
    %208 = vector.broadcast %cst_111 : f32 to vector<8x128xf32>
    %209 = arith.addf %207, %208 : vector<8x128xf32>
    %210 = math.tanh %202 : vector<8x128xf32>
    %c96_i32_112 = arith.constant 96 : i32
    %211 = tpu.dynamic_rotate %209 by %c96_i32_112 dim 1 : vector<8x128xf32>, i32 -> vector<8x128xf32>
    %c64_i32_113 = arith.constant 64 : i32
    %212 = tpu.dynamic_rotate %209 by %c64_i32_113 dim 1 : vector<8x128xf32>, i32 -> vector<8x128xf32>
    %c32_i32_114 = arith.constant 32 : i32
    %213 = tpu.dynamic_rotate %210 by %c32_i32_114 dim 1 : vector<8x128xf32>, i32 -> vector<8x128xf32>
    %214 = arith.mulf %209, %133 : vector<8x128xf32>
    %215 = arith.mulf %211, %213 : vector<8x128xf32>
    %216 = arith.addf %214, %215 : vector<8x128xf32>
    %c32_i32_115 = arith.constant 32 : i32
    %217 = vector.broadcast %c32_i32_115 : i32 to vector<8x128xi32>
    %218 = arith.cmpi slt, %0, %217 : vector<8x128xi32>
    %219 = math.tanh %216 : vector<8x128xf32>
    %220 = arith.mulf %212, %219 : vector<8x128xf32>
    %cst_116 = arith.constant 0.000000e+00 : f32
    %221 = vector.broadcast %cst_116 : f32 to vector<8x128xf32>
    %222 = arith.select %218, %220, %221 : vector<8x128xi1>, vector<8x128xf32>
    %223 = arith.truncf %222 : vector<8x128xf32> to vector<8x128xbf16>
    %c3_117 = arith.constant 3 : index
    %c0_118 = arith.constant 0 : index
    %c0_119 = arith.constant 0 : index
    %224 = vector.load %arg2[%c3_117, %c0_118, %c0_119] : memref<5x128x128xbf16, #tpu.memory_space<vmem>>, vector<1x128x128xbf16>
    %225 = vector.shape_cast %224 : vector<1x128x128xbf16> to vector<128x128xbf16>
    %cst_120 = arith.constant dense<0.000000e+00> : vector<8x128xf32>
    %226 = tpu.matmul %223, %225, %cst_120 {dimension_numbers = #tpu.dot_dimension_numbers<[1], [0], [0], [1], [0, 0, 1, 1], [], []>} : vector<8x128xbf16>, vector<128x128xbf16>, vector<8x128xf32> -> vector<8x128xf32>
    %c3_121 = arith.constant 3 : index
    %c0_122 = arith.constant 0 : index
    %227 = vector.load %arg3[%c3_121, %c0_122] : memref<8x128xf32, #tpu.memory_space<vmem>>, vector<1x128xf32>
    %228 = vector.broadcast %227 : vector<1x128xf32> to vector<8x128xf32>
    %229 = arith.addf %226, %228 : vector<8x128xf32>
    %c1_123 = arith.constant 1 : index
    %c0_124 = arith.constant 0 : index
    %c0_125 = arith.constant 0 : index
    %230 = vector.load %arg4[%c1_123, %c0_124, %c0_125] : memref<4x8x128xf32, #tpu.memory_space<vmem>>, vector<1x8x128xf32>
    %231 = vector.shape_cast %230 : vector<1x8x128xf32> to vector<8x128xf32>
    %232 = vector.shape_cast %229 : vector<8x128xf32> to vector<1x8x128xf32>
    tpu.vector_store %arg4[%c1_123, %c0_124, %c0_125], %232 {strides = array<i32>} : memref<4x8x128xf32, #tpu.memory_space<vmem>>, vector<1x8x128xf32>,
    %cst_126 = arith.constant dense<0xFF800000> : vector<8xf32>
    %233 = vector.multi_reduction <maximumf>, %229, %cst_126 [1] : vector<8x128xf32> to vector<8xf32>
    %234 = vector.shape_cast %233 : vector<8xf32> to vector<8x1xf32>
    %235 = vector.broadcast %234 : vector<8x1xf32> to vector<8x128xf32>
    %236 = arith.cmpf oeq, %229, %235 : vector<8x128xf32>
    %c128_i32_127 = arith.constant 128 : i32
    %237 = vector.broadcast %c128_i32_127 : i32 to vector<8x128xi32>
    %238 = arith.select %236, %0, %237 : vector<8x128xi1>, vector<8x128xi32>
    %cst_128 = arith.constant dense<2147483647> : vector<8xi32>
    %239 = vector.multi_reduction <minsi>, %238, %cst_128 [1] : vector<8x128xi32> to vector<8xi32>
    %240 = vector.shape_cast %239 : vector<8xi32> to vector<8x1xi32>
    %241 = vector.broadcast %240 : vector<8x1xi32> to vector<8x128xi32>
    %242 = arith.cmpi eq, %0, %241 : vector<8x128xi32>
    %243 = arith.extui %242 : vector<8x128xi1> to vector<8x128xi32>
    %244 = arith.sitofp %243 : vector<8x128xi32> to vector<8x128xf32>
    %245 = arith.truncf %244 : vector<8x128xf32> to vector<8x128xbf16>
    %c4_129 = arith.constant 4 : index
    %c0_130 = arith.constant 0 : index
    %c0_131 = arith.constant 0 : index
    %246 = vector.load %arg2[%c4_129, %c0_130, %c0_131] : memref<5x128x128xbf16, #tpu.memory_space<vmem>>, vector<1x128x128xbf16>
    %247 = vector.shape_cast %246 : vector<1x128x128xbf16> to vector<128x128xbf16>
    %cst_132 = arith.constant dense<0.000000e+00> : vector<8x128xf32>
    %248 = tpu.matmul %245, %247, %cst_132 {dimension_numbers = #tpu.dot_dimension_numbers<[1], [0], [0], [1], [0, 0, 1, 1], [], []>} : vector<8x128xbf16>, vector<128x128xbf16>, vector<8x128xf32> -> vector<8x128xf32>
    %249 = arith.addf %193, %248 : vector<8x128xf32>
    %250 = arith.truncf %249 : vector<8x128xf32> to vector<8x128xbf16>
    %c1_133 = arith.constant 1 : index
    %c0_134 = arith.constant 0 : index
    %c0_135 = arith.constant 0 : index
    %251 = vector.load %arg2[%c1_133, %c0_134, %c0_135] : memref<5x128x128xbf16, #tpu.memory_space<vmem>>, vector<1x128x128xbf16>
    %252 = vector.shape_cast %251 : vector<1x128x128xbf16> to vector<128x128xbf16>
    %cst_136 = arith.constant dense<0.000000e+00> : vector<8x128xf32>
    %253 = tpu.matmul %250, %252, %cst_136 {dimension_numbers = #tpu.dot_dimension_numbers<[1], [0], [0], [1], [0, 0, 1, 1], [], []>} : vector<8x128xbf16>, vector<128x128xbf16>, vector<8x128xf32> -> vector<8x128xf32>
    %c1_137 = arith.constant 1 : index
    %c0_138 = arith.constant 0 : index
    %254 = vector.load %arg3[%c1_137, %c0_138] : memref<8x128xf32, #tpu.memory_space<vmem>>, vector<1x128xf32>
    %255 = vector.broadcast %254 : vector<1x128xf32> to vector<8x128xf32>
    %256 = arith.addf %253, %255 : vector<8x128xf32>
    %cst_139 = arith.constant 5.000000e-01 : f32
    %257 = vector.broadcast %cst_139 : f32 to vector<8x128xf32>
    %258 = arith.mulf %257, %256 : vector<8x128xf32>
    %259 = math.tanh %258 : vector<8x128xf32>
    %cst_140 = arith.constant 5.000000e-01 : f32
    %260 = vector.broadcast %cst_140 : f32 to vector<8x128xf32>
    %261 = arith.mulf %260, %259 : vector<8x128xf32>
    %cst_141 = arith.constant 5.000000e-01 : f32
    %262 = vector.broadcast %cst_141 : f32 to vector<8x128xf32>
    %263 = arith.addf %261, %262 : vector<8x128xf32>
    %264 = math.tanh %256 : vector<8x128xf32>
    %c96_i32_142 = arith.constant 96 : i32
    %265 = tpu.dynamic_rotate %263 by %c96_i32_142 dim 1 : vector<8x128xf32>, i32 -> vector<8x128xf32>
    %c64_i32_143 = arith.constant 64 : i32
    %266 = tpu.dynamic_rotate %263 by %c64_i32_143 dim 1 : vector<8x128xf32>, i32 -> vector<8x128xf32>
    %c32_i32_144 = arith.constant 32 : i32
    %267 = tpu.dynamic_rotate %264 by %c32_i32_144 dim 1 : vector<8x128xf32>, i32 -> vector<8x128xf32>
    %268 = arith.mulf %263, %187 : vector<8x128xf32>
    %269 = arith.mulf %265, %267 : vector<8x128xf32>
    %270 = arith.addf %268, %269 : vector<8x128xf32>
    %c32_i32_145 = arith.constant 32 : i32
    %271 = vector.broadcast %c32_i32_145 : i32 to vector<8x128xi32>
    %272 = arith.cmpi slt, %0, %271 : vector<8x128xi32>
    %273 = math.tanh %270 : vector<8x128xf32>
    %274 = arith.mulf %266, %273 : vector<8x128xf32>
    %cst_146 = arith.constant 0.000000e+00 : f32
    %275 = vector.broadcast %cst_146 : f32 to vector<8x128xf32>
    %276 = arith.select %272, %274, %275 : vector<8x128xi1>, vector<8x128xf32>
    %c32_i32_147 = arith.constant 32 : i32
    %277 = tpu.dynamic_rotate %276 by %c32_i32_147 dim 1 : vector<8x128xf32>, i32 -> vector<8x128xf32>
    %278 = arith.addf %222, %277 : vector<8x128xf32>
    %279 = arith.truncf %278 : vector<8x128xf32> to vector<8x128xbf16>
    %c2_148 = arith.constant 2 : index
    %c0_149 = arith.constant 0 : index
    %c0_150 = arith.constant 0 : index
    %280 = vector.load %arg2[%c2_148, %c0_149, %c0_150] : memref<5x128x128xbf16, #tpu.memory_space<vmem>>, vector<1x128x128xbf16>
    %281 = vector.shape_cast %280 : vector<1x128x128xbf16> to vector<128x128xbf16>
    %cst_151 = arith.constant dense<0.000000e+00> : vector<8x128xf32>
    %282 = tpu.matmul %279, %281, %cst_151 {dimension_numbers = #tpu.dot_dimension_numbers<[1], [0], [0], [1], [0, 0, 1, 1], [], []>} : vector<8x128xbf16>, vector<128x128xbf16>, vector<8x128xf32> -> vector<8x128xf32>
    %c2_152 = arith.constant 2 : index
    %c0_153 = arith.constant 0 : index
    %283 = vector.load %arg3[%c2_152, %c0_153] : memref<8x128xf32, #tpu.memory_space<vmem>>, vector<1x128xf32>
    %284 = vector.broadcast %283 : vector<1x128xf32> to vector<8x128xf32>
    %285 = arith.addf %282, %284 : vector<8x128xf32>
    %cst_154 = arith.constant 5.000000e-01 : f32
    %286 = vector.broadcast %cst_154 : f32 to vector<8x128xf32>
    %287 = arith.mulf %286, %285 : vector<8x128xf32>
    %288 = math.tanh %287 : vector<8x128xf32>
    %cst_155 = arith.constant 5.000000e-01 : f32
    %289 = vector.broadcast %cst_155 : f32 to vector<8x128xf32>
    %290 = arith.mulf %289, %288 : vector<8x128xf32>
    %cst_156 = arith.constant 5.000000e-01 : f32
    %291 = vector.broadcast %cst_156 : f32 to vector<8x128xf32>
    %292 = arith.addf %290, %291 : vector<8x128xf32>
    %293 = math.tanh %285 : vector<8x128xf32>
    %c96_i32_157 = arith.constant 96 : i32
    %294 = tpu.dynamic_rotate %292 by %c96_i32_157 dim 1 : vector<8x128xf32>, i32 -> vector<8x128xf32>
    %c64_i32_158 = arith.constant 64 : i32
    %295 = tpu.dynamic_rotate %292 by %c64_i32_158 dim 1 : vector<8x128xf32>, i32 -> vector<8x128xf32>
    %c32_i32_159 = arith.constant 32 : i32
    %296 = tpu.dynamic_rotate %293 by %c32_i32_159 dim 1 : vector<8x128xf32>, i32 -> vector<8x128xf32>
    %297 = arith.mulf %292, %216 : vector<8x128xf32>
    %298 = arith.mulf %294, %296 : vector<8x128xf32>
    %299 = arith.addf %297, %298 : vector<8x128xf32>
    %c32_i32_160 = arith.constant 32 : i32
    %300 = vector.broadcast %c32_i32_160 : i32 to vector<8x128xi32>
    %301 = arith.cmpi slt, %0, %300 : vector<8x128xi32>
    %302 = math.tanh %299 : vector<8x128xf32>
    %303 = arith.mulf %295, %302 : vector<8x128xf32>
    %cst_161 = arith.constant 0.000000e+00 : f32
    %304 = vector.broadcast %cst_161 : f32 to vector<8x128xf32>
    %305 = arith.select %301, %303, %304 : vector<8x128xi1>, vector<8x128xf32>
    %306 = arith.truncf %305 : vector<8x128xf32> to vector<8x128xbf16>
    %c3_162 = arith.constant 3 : index
    %c0_163 = arith.constant 0 : index
    %c0_164 = arith.constant 0 : index
    %307 = vector.load %arg2[%c3_162, %c0_163, %c0_164] : memref<5x128x128xbf16, #tpu.memory_space<vmem>>, vector<1x128x128xbf16>
    %308 = vector.shape_cast %307 : vector<1x128x128xbf16> to vector<128x128xbf16>
    %cst_165 = arith.constant dense<0.000000e+00> : vector<8x128xf32>
    %309 = tpu.matmul %306, %308, %cst_165 {dimension_numbers = #tpu.dot_dimension_numbers<[1], [0], [0], [1], [0, 0, 1, 1], [], []>} : vector<8x128xbf16>, vector<128x128xbf16>, vector<8x128xf32> -> vector<8x128xf32>
    %c3_166 = arith.constant 3 : index
    %c0_167 = arith.constant 0 : index
    %310 = vector.load %arg3[%c3_166, %c0_167] : memref<8x128xf32, #tpu.memory_space<vmem>>, vector<1x128xf32>
    %311 = vector.broadcast %310 : vector<1x128xf32> to vector<8x128xf32>
    %312 = arith.addf %309, %311 : vector<8x128xf32>
    %c2_168 = arith.constant 2 : index
    %c0_169 = arith.constant 0 : index
    %c0_170 = arith.constant 0 : index
    %313 = vector.load %arg4[%c2_168, %c0_169, %c0_170] : memref<4x8x128xf32, #tpu.memory_space<vmem>>, vector<1x8x128xf32>
    %314 = vector.shape_cast %313 : vector<1x8x128xf32> to vector<8x128xf32>
    %315 = vector.shape_cast %312 : vector<8x128xf32> to vector<1x8x128xf32>
    tpu.vector_store %arg4[%c2_168, %c0_169, %c0_170], %315 {strides = array<i32>} : memref<4x8x128xf32, #tpu.memory_space<vmem>>, vector<1x8x128xf32>,
    %cst_171 = arith.constant dense<0xFF800000> : vector<8xf32>
    %316 = vector.multi_reduction <maximumf>, %312, %cst_171 [1] : vector<8x128xf32> to vector<8xf32>
    %317 = vector.shape_cast %316 : vector<8xf32> to vector<8x1xf32>
    %318 = vector.broadcast %317 : vector<8x1xf32> to vector<8x128xf32>
    %319 = arith.cmpf oeq, %312, %318 : vector<8x128xf32>
    %c128_i32_172 = arith.constant 128 : i32
    %320 = vector.broadcast %c128_i32_172 : i32 to vector<8x128xi32>
    %321 = arith.select %319, %0, %320 : vector<8x128xi1>, vector<8x128xi32>
    %cst_173 = arith.constant dense<2147483647> : vector<8xi32>
    %322 = vector.multi_reduction <minsi>, %321, %cst_173 [1] : vector<8x128xi32> to vector<8xi32>
    %323 = vector.shape_cast %322 : vector<8xi32> to vector<8x1xi32>
    %324 = vector.broadcast %323 : vector<8x1xi32> to vector<8x128xi32>
    %325 = arith.cmpi eq, %0, %324 : vector<8x128xi32>
    %326 = arith.extui %325 : vector<8x128xi1> to vector<8x128xi32>
    %327 = arith.sitofp %326 : vector<8x128xi32> to vector<8x128xf32>
    %328 = arith.truncf %327 : vector<8x128xf32> to vector<8x128xbf16>
    %c4_174 = arith.constant 4 : index
    %c0_175 = arith.constant 0 : index
    %c0_176 = arith.constant 0 : index
    %329 = vector.load %arg2[%c4_174, %c0_175, %c0_176] : memref<5x128x128xbf16, #tpu.memory_space<vmem>>, vector<1x128x128xbf16>
    %330 = vector.shape_cast %329 : vector<1x128x128xbf16> to vector<128x128xbf16>
    %cst_177 = arith.constant dense<0.000000e+00> : vector<8x128xf32>
    %331 = tpu.matmul %328, %330, %cst_177 {dimension_numbers = #tpu.dot_dimension_numbers<[1], [0], [0], [1], [0, 0, 1, 1], [], []>} : vector<8x128xbf16>, vector<128x128xbf16>, vector<8x128xf32> -> vector<8x128xf32>
    %332 = arith.addf %276, %331 : vector<8x128xf32>
    %333 = arith.truncf %332 : vector<8x128xf32> to vector<8x128xbf16>
    %c1_178 = arith.constant 1 : index
    %c0_179 = arith.constant 0 : index
    %c0_180 = arith.constant 0 : index
    %334 = vector.load %arg2[%c1_178, %c0_179, %c0_180] : memref<5x128x128xbf16, #tpu.memory_space<vmem>>, vector<1x128x128xbf16>
    %335 = vector.shape_cast %334 : vector<1x128x128xbf16> to vector<128x128xbf16>
    %cst_181 = arith.constant dense<0.000000e+00> : vector<8x128xf32>
    %336 = tpu.matmul %333, %335, %cst_181 {dimension_numbers = #tpu.dot_dimension_numbers<[1], [0], [0], [1], [0, 0, 1, 1], [], []>} : vector<8x128xbf16>, vector<128x128xbf16>, vector<8x128xf32> -> vector<8x128xf32>
    %c1_182 = arith.constant 1 : index
    %c0_183 = arith.constant 0 : index
    %337 = vector.load %arg3[%c1_182, %c0_183] : memref<8x128xf32, #tpu.memory_space<vmem>>, vector<1x128xf32>
    %338 = vector.broadcast %337 : vector<1x128xf32> to vector<8x128xf32>
    %339 = arith.addf %336, %338 : vector<8x128xf32>
    %cst_184 = arith.constant 5.000000e-01 : f32
    %340 = vector.broadcast %cst_184 : f32 to vector<8x128xf32>
    %341 = arith.mulf %340, %339 : vector<8x128xf32>
    %342 = math.tanh %341 : vector<8x128xf32>
    %cst_185 = arith.constant 5.000000e-01 : f32
    %343 = vector.broadcast %cst_185 : f32 to vector<8x128xf32>
    %344 = arith.mulf %343, %342 : vector<8x128xf32>
    %cst_186 = arith.constant 5.000000e-01 : f32
    %345 = vector.broadcast %cst_186 : f32 to vector<8x128xf32>
    %346 = arith.addf %344, %345 : vector<8x128xf32>
    %347 = math.tanh %339 : vector<8x128xf32>
    %c96_i32_187 = arith.constant 96 : i32
    %348 = tpu.dynamic_rotate %346 by %c96_i32_187 dim 1 : vector<8x128xf32>, i32 -> vector<8x128xf32>
    %c64_i32_188 = arith.constant 64 : i32
    %349 = tpu.dynamic_rotate %346 by %c64_i32_188 dim 1 : vector<8x128xf32>, i32 -> vector<8x128xf32>
    %c32_i32_189 = arith.constant 32 : i32
    %350 = tpu.dynamic_rotate %347 by %c32_i32_189 dim 1 : vector<8x128xf32>, i32 -> vector<8x128xf32>
    %351 = arith.mulf %346, %270 : vector<8x128xf32>
    %352 = arith.mulf %348, %350 : vector<8x128xf32>
    %353 = arith.addf %351, %352 : vector<8x128xf32>
    %c32_i32_190 = arith.constant 32 : i32
    %354 = vector.broadcast %c32_i32_190 : i32 to vector<8x128xi32>
    %355 = arith.cmpi slt, %0, %354 : vector<8x128xi32>
    %356 = math.tanh %353 : vector<8x128xf32>
    %357 = arith.mulf %349, %356 : vector<8x128xf32>
    %cst_191 = arith.constant 0.000000e+00 : f32
    %358 = vector.broadcast %cst_191 : f32 to vector<8x128xf32>
    %359 = arith.select %355, %357, %358 : vector<8x128xi1>, vector<8x128xf32>
    %c32_i32_192 = arith.constant 32 : i32
    %360 = tpu.dynamic_rotate %359 by %c32_i32_192 dim 1 : vector<8x128xf32>, i32 -> vector<8x128xf32>
    %361 = arith.addf %305, %360 : vector<8x128xf32>
    %362 = arith.truncf %361 : vector<8x128xf32> to vector<8x128xbf16>
    %c2_193 = arith.constant 2 : index
    %c0_194 = arith.constant 0 : index
    %c0_195 = arith.constant 0 : index
    %363 = vector.load %arg2[%c2_193, %c0_194, %c0_195] : memref<5x128x128xbf16, #tpu.memory_space<vmem>>, vector<1x128x128xbf16>
    %364 = vector.shape_cast %363 : vector<1x128x128xbf16> to vector<128x128xbf16>
    %cst_196 = arith.constant dense<0.000000e+00> : vector<8x128xf32>
    %365 = tpu.matmul %362, %364, %cst_196 {dimension_numbers = #tpu.dot_dimension_numbers<[1], [0], [0], [1], [0, 0, 1, 1], [], []>} : vector<8x128xbf16>, vector<128x128xbf16>, vector<8x128xf32> -> vector<8x128xf32>
    %c2_197 = arith.constant 2 : index
    %c0_198 = arith.constant 0 : index
    %366 = vector.load %arg3[%c2_197, %c0_198] : memref<8x128xf32, #tpu.memory_space<vmem>>, vector<1x128xf32>
    %367 = vector.broadcast %366 : vector<1x128xf32> to vector<8x128xf32>
    %368 = arith.addf %365, %367 : vector<8x128xf32>
    %cst_199 = arith.constant 5.000000e-01 : f32
    %369 = vector.broadcast %cst_199 : f32 to vector<8x128xf32>
    %370 = arith.mulf %369, %368 : vector<8x128xf32>
    %371 = math.tanh %370 : vector<8x128xf32>
    %cst_200 = arith.constant 5.000000e-01 : f32
    %372 = vector.broadcast %cst_200 : f32 to vector<8x128xf32>
    %373 = arith.mulf %372, %371 : vector<8x128xf32>
    %cst_201 = arith.constant 5.000000e-01 : f32
    %374 = vector.broadcast %cst_201 : f32 to vector<8x128xf32>
    %375 = arith.addf %373, %374 : vector<8x128xf32>
    %376 = math.tanh %368 : vector<8x128xf32>
    %c96_i32_202 = arith.constant 96 : i32
    %377 = tpu.dynamic_rotate %375 by %c96_i32_202 dim 1 : vector<8x128xf32>, i32 -> vector<8x128xf32>
    %c64_i32_203 = arith.constant 64 : i32
    %378 = tpu.dynamic_rotate %375 by %c64_i32_203 dim 1 : vector<8x128xf32>, i32 -> vector<8x128xf32>
    %c32_i32_204 = arith.constant 32 : i32
    %379 = tpu.dynamic_rotate %376 by %c32_i32_204 dim 1 : vector<8x128xf32>, i32 -> vector<8x128xf32>
    %380 = arith.mulf %375, %299 : vector<8x128xf32>
    %381 = arith.mulf %377, %379 : vector<8x128xf32>
    %382 = arith.addf %380, %381 : vector<8x128xf32>
    %c32_i32_205 = arith.constant 32 : i32
    %383 = vector.broadcast %c32_i32_205 : i32 to vector<8x128xi32>
    %384 = arith.cmpi slt, %0, %383 : vector<8x128xi32>
    %385 = math.tanh %382 : vector<8x128xf32>
    %386 = arith.mulf %378, %385 : vector<8x128xf32>
    %cst_206 = arith.constant 0.000000e+00 : f32
    %387 = vector.broadcast %cst_206 : f32 to vector<8x128xf32>
    %388 = arith.select %384, %386, %387 : vector<8x128xi1>, vector<8x128xf32>
    %389 = arith.truncf %388 : vector<8x128xf32> to vector<8x128xbf16>
    %c3_207 = arith.constant 3 : index
    %c0_208 = arith.constant 0 : index
    %c0_209 = arith.constant 0 : index
    %390 = vector.load %arg2[%c3_207, %c0_208, %c0_209] : memref<5x128x128xbf16, #tpu.memory_space<vmem>>, vector<1x128x128xbf16>
    %391 = vector.shape_cast %390 : vector<1x128x128xbf16> to vector<128x128xbf16>
    %cst_210 = arith.constant dense<0.000000e+00> : vector<8x128xf32>
    %392 = tpu.matmul %389, %391, %cst_210 {dimension_numbers = #tpu.dot_dimension_numbers<[1], [0], [0], [1], [0, 0, 1, 1], [], []>} : vector<8x128xbf16>, vector<128x128xbf16>, vector<8x128xf32> -> vector<8x128xf32>
    %c3_211 = arith.constant 3 : index
    %c0_212 = arith.constant 0 : index
    %393 = vector.load %arg3[%c3_211, %c0_212] : memref<8x128xf32, #tpu.memory_space<vmem>>, vector<1x128xf32>
    %394 = vector.broadcast %393 : vector<1x128xf32> to vector<8x128xf32>
    %395 = arith.addf %392, %394 : vector<8x128xf32>
    %c3_213 = arith.constant 3 : index
    %c0_214 = arith.constant 0 : index
    %c0_215 = arith.constant 0 : index
    %396 = vector.load %arg4[%c3_213, %c0_214, %c0_215] : memref<4x8x128xf32, #tpu.memory_space<vmem>>, vector<1x8x128xf32>
    %397 = vector.shape_cast %396 : vector<1x8x128xf32> to vector<8x128xf32>
    %398 = vector.shape_cast %395 : vector<8x128xf32> to vector<1x8x128xf32>
    tpu.vector_store %arg4[%c3_213, %c0_214, %c0_215], %398 {strides = array<i32>} : memref<4x8x128xf32, #tpu.memory_space<vmem>>, vector<1x8x128xf32>,
    return
  }
}

</mosaic_0001>

<bundles_post_ra>
// kernel: _lambda_.1
= control target key start
LH: loop header
LB: loop body
LE: loop exit
PB: predicated region body
PF: predicated region fallthrough
CT: control target
= control target key end

     0   :  { %9 = vsyncpa [#allocation3], 0  ;;  %s3205_s15 = smov [#allocation2]   ;;  %s3682_s0 = inlined_call_operand.vmem [shape: f32[8,128], index: 0, kind: input, shape index: {}]   ;;  %s3683_s1 = inlined_call_operand.vmem [shape: f32[4,8,128], index: 1, kind: input, shape index: {}]   ;;  %s3684_s2 = inlined_call_operand.hbm [shape: bf16[5,128,128], index: 2, kind: input, shape index: {}]   ;;  %s3685_s3 = inlined_call_operand.vmem [shape: f32[8,128], index: 3, kind: input, shape index: {}]   ;;  %s3686_s4 = inlined_call_operand.vmem [shape: f32[4,8,128], index: 4, kind: output, shape index: {}]  }
   0x1   :  { %s19_s16 = sshll.u32 %s3205_s15, 4  ;;  %s3181_s19 = scalar_lea.hbm %s3684_s2, 5120  ;;  %s20_s16 = int_to_ptr.vmem [resolvable:$true] %s19_s16 }
   0x2   :  { %p3182_p0 = scmp.ne.s32.totalorder %s3684_s2, %s3181_s19  ;;  %p3185_p1 = scmp.lt.u32.totalorder %s3181_s19, %s3684_s2 }
   0x4   :  { %p3187_p2 = pnand %p3185_p1, %p3182_p0 }
   0x6   :  { %3190 = shalt.err (!%p3187_p2)
}
   0x7   :  { %s3191_s24 = scalar_lea.vmem %s20_s16, 5120  ;;  %p3196_p4 = scmp.lt.s32.totalorder %s20_s16, %s20_s16 }
   0x8   :  { %p3192_p3 = scmp.ne.s32.totalorder %s20_s16, %s3191_s24  ;;  %p3197_p5 = scmp.lt.s32.totalorder %s3191_s24, %s3191_s24 }
   0xa   :  { %p3198_p6 = por %p3197_p5, %p3196_p4 }
   0xc   :  { %p3199_p7 = pnand %p3198_p6, %p3192_p3 }
   0xe   :  { %3202 = shalt.err (!%p3199_p7)
}
   0xf   :  { %s3206_s25 = smov 64   ;;  %s3207_s26 = smov 4  }
  0x10   :  { %25 = dma.hbm_to_vmem [thread:$0]  %s3684_s2, 5120, %s20_s16, [#allocation3], %s3206_s25, %s3206_s25, %s3207_s26  }
  0x11   :  { %3203 = dma.done.wait [#allocation3], 5120  }
  0x12   :  { %3204 = vsyncadd [#allocation3], 4294962176  ;;  %v3208_v0 = vmov 0.0   ;;  %vm3209_vm0 = vmmov 0   ;;  %v2985_v1 = vld [vmem:[#allocation2] sm:$0xff]   ;;  %v2986_v2 = vld [vmem:[#allocation2 + $0x8] sm:$0xff]   ;;  %v32_v34 = vlaneseq }
  0x13   :  { %2597 = vmatprep.subr.bf16.mxu0 %v3208_v0  ;;  %2613 = vmatprep.mubr.msk.bf16.mxu0 %vm3209_vm0, %v3208_v0  ;;  %v2987_v3 = vld [vmem:[#allocation2 + $0x10] sm:$0xff]   ;;  %v3260_v4 = vld [vmem:[#allocation2 + $0x40] sm:$0xff]   ;;  %v2988_v5 = vld [vmem:[#allocation2 + $0x18] sm:$0xff]   ;;  %v3210_v38 = vmov 1.0|1.0   ;;  %s3211_s9 = smov 96  }
  0x14   :  { %2617 = vmatprep.subr.bf16.mxu1 %v3208_v0  ;;  %2633 = vmatprep.mubr.msk.bf16.mxu1 %vm3209_vm0, %v3208_v0  ;;  %v3264_v6 = vld [vmem:[#allocation2 + $0x48] sm:$0xff]   ;;  %v2989_v7 = vld [vmem:[#allocation2 + $0x20] sm:$0xff]   ;;  %v3267_v8 = vld [vmem:[#allocation2 + $0x50] sm:$0xff]   ;;  %v3317_v36 = vand.u32 127, %v32_v34  ;;  %s3212_s10 = smov 32  }
  0x15   :  { %2598 = vmatpush3.bf16.msra.mxu0 %v2985_v1  ;;  %2618 = vmatpush3.bf16.msra.mxu1 %v3260_v4  ;;  %v2990_v9 = vld [vmem:[#allocation2 + $0x28] sm:$0xff]   ;;  %v3272_v10 = vld [vmem:[#allocation2 + $0x58] sm:$0xff]   ;;  %v2991_v11 = vld [vmem:[#allocation2 + $0x30] sm:$0xff]  }
  0x16   :  { %2599 = vmatprep.subr.bf16.mxu0 %v3208_v0  ;;  %2619 = vmatprep.subr.bf16.mxu1 %v3208_v0  ;;  %v3277_v12 = vld [vmem:[#allocation2 + $0x60] sm:$0xff]   ;;  %v2992_v13 = vld [vmem:[#allocation2 + $0x38] sm:$0xff]   ;;  %v3285_v15 = vld [vmem:[#allocation2 + $0x68] sm:$0xff]   ;;  %vm413_vm1 = vcmp.eq.s32.totalorder %v3317_v36, 0  ;;  %vm278_vm3 = vcmp.lt.s32.totalorder %v3317_v36, 32 }
  0x17   :  { %v41_v14 = vld [vmem:[%s3682_s0] sm:$0xff]  ;;  %v3295_v17 = vld [vmem:[#allocation2 + $0x70] sm:$0xff]   ;;  %v3299_v18 = vld [vmem:[#allocation2 + $0x78] sm:$0xff]  }
  0x18   :  { %v42_v16 = vpack.c.bf16 %v41_v14, %v41_v14  ;;  %v2250_v19 = vld [vmem:[%s3685_s3] ss:$0 sm:$0xff]  ;;  %v3002_v29 = vld [vmem:[#allocation2 + $0x108] sm:$0xff]   ;;  %v3003_v30 = vld [vmem:[#allocation2 + $0x110] sm:$0xff]  }
  0x19   :  { %2600 = vmatpush3.bf16.msra.mxu0 %v2986_v2  ;;  %2620 = vmatpush3.bf16.msra.mxu1 %v3264_v6  ;;  %v34_v20 = vld [vmem:[%s3683_s1] sm:$0xff]  ;;  %v3004_v31 = vld [vmem:[#allocation2 + $0x118] sm:$0xff]   ;;  %v3006_v33 = vld [vmem:[#allocation2 + $0x128] sm:$0xff]  }
  0x1a   :  { %2601 = vmatprep.subr.bf16.mxu0 %v3208_v0  ;;  %2621 = vmatprep.subr.bf16.mxu1 %v3208_v0  ;;  %v3001_v27 = vld [vmem:[#allocation2 + $0x100] sm:$0xff]   ;;  %v3007_v35 = vld [vmem:[#allocation2 + $0x130] sm:$0xff]   ;;  %v3008_v37 = vld [vmem:[#allocation2 + $0x138] sm:$0xff]  }
  0x1b   :  { %v3005_v32 = vld [vmem:[#allocation2 + $0x120] sm:$0xff]   ;;  %vm2286_vm2 = vmpackc.low %vm413_vm1, %vm413_vm1  ;;  %v3010_v52 = vld [vmem:[#allocation2 + $0x88] sm:$0xff]  }
  0x1c   :  { %v3328_v39 = vld [vmem:[%s3685_s3 + $0x1] ss:$0 sm:$0xff]  ;;  %v3011_v56 = vld [vmem:[#allocation2 + $0x90] sm:$0xff]   ;;  %v3012_v57 = vld [vmem:[#allocation2 + $0x98] sm:$0xff]  }
  0x1d   :  { %2602 = vmatpush3.bf16.msra.mxu0 %v2987_v3  ;;  %2622 = vmatpush3.bf16.msra.mxu1 %v3267_v8  ;;  %v3009_v50 = vld [vmem:[#allocation2 + $0x80] sm:$0xff]   ;;  %v3014_v59 = vld [vmem:[#allocation2 + $0xa8] sm:$0xff]   ;;  %v3015_v60 = vld [vmem:[#allocation2 + $0xb0] sm:$0xff]  }
  0x1e   :  { %2603 = vmatprep.subr.bf16.mxu0 %v3208_v0  ;;  %2623 = vmatprep.subr.bf16.mxu1 %v3208_v0  ;;  %v3013_v58 = vld [vmem:[#allocation2 + $0xa0] sm:$0xff]   ;;  %v2248_v62 = vld [vmem:[%s3683_s1 + $0x10] sm:$0xff]  ;;  %vm3433_vm4 = vmpackc.low %vm278_vm3, %vm278_vm3 }
  0x21   :  { %2604 = vmatpush3.bf16.msra.mxu0 %v2988_v5  ;;  %2624 = vmatpush3.bf16.msra.mxu1 %v3272_v10  ;;  %v3016_v5 = vld [vmem:[#allocation2 + $0xb8] sm:$0xff]  }
  0x22   :  { %2605 = vmatprep.subr.bf16.mxu0 %v3208_v0  ;;  %2625 = vmatprep.subr.bf16.mxu1 %v3208_v0 }
  0x25   :  { %2606 = vmatpush3.bf16.msra.mxu0 %v2989_v7  ;;  %2626 = vmatpush3.bf16.msra.mxu1 %v3277_v12 }
  0x26   :  { %2607 = vmatprep.subr.bf16.mxu0 %v3208_v0  ;;  %2627 = vmatprep.subr.bf16.mxu1 %v3208_v0 }
  0x29   :  { %2608 = vmatpush3.bf16.msra.mxu0 %v2990_v9  ;;  %2628 = vmatpush3.bf16.msra.mxu1 %v3285_v15 }
  0x2a   :  { %2609 = vmatprep.subr.bf16.mxu0 %v3208_v0  ;;  %2629 = vmatprep.subr.bf16.mxu1 %v3208_v0 }
  0x2d   :  { %2610 = vmatpush3.bf16.msra.mxu0 %v2991_v11  ;;  %2630 = vmatpush3.bf16.msra.mxu1 %v3295_v17 }
  0x2e   :  { %2611 = vmatprep.subr.bf16.mxu0 %v3208_v0  ;;  %2631 = vmatprep.subr.bf16.mxu1 %v3208_v0 }
  0x31   :  { %2612 = vmatpush3.bf16.msra.mxu0 %v2992_v13  ;;  %2632 = vmatpush3.bf16.msra.mxu1 %v3299_v18 }
  0x32   :  { %2637 = vmatprep.subr.bf16.mxu0 %v3208_v0  ;;  %2657 = vmatprep.subr.bf16.mxu1 %v3208_v0 }
  0x34   :  { %2614 = vmatmul.mubr.bf16.vlgmr.msra.gmra.mrb[0].mxu0 %v42_v16  ;;  %v2247_v16 = vld [vmem:[%s3683_s1 + $0x8] sm:$0xff] }
  0x35   :  { %2653 = vmatprep.mubr.msk.bf16.mxu0 %vm3209_vm0, %v3208_v0  ;;  %2638 = vmatpush3.bf16.msra.mxu0 %v3009_v50 }
  0x36   :  { %2639 = vmatprep.subr.bf16.mxu0 %v3208_v0 }
  0x39   :  { %2640 = vmatpush3.bf16.msra.mxu0 %v3010_v52 }
  0x3a   :  { %2641 = vmatprep.subr.bf16.mxu0 %v3208_v0 }
  0x3d   :  { %2642 = vmatpush3.bf16.msra.mxu0 %v3011_v56 }
  0x3e   :  { %2643 = vmatprep.subr.bf16.mxu0 %v3208_v0 }
  0x41   :  { %2644 = vmatpush3.bf16.msra.mxu0 %v3012_v57 }
  0x42   :  { %2645 = vmatprep.subr.bf16.mxu0 %v3208_v0 }
  0x45   :  { %2646 = vmatpush3.bf16.msra.mxu0 %v3013_v58 }
  0x46   :  { %2647 = vmatprep.subr.bf16.mxu0 %v3208_v0 }
  0x49   :  { %2648 = vmatpush3.bf16.msra.mxu0 %v3014_v59 }
  0x4a   :  { %2649 = vmatprep.subr.bf16.mxu0 %v3208_v0 }
  0x4d   :  { %2650 = vmatpush3.bf16.msra.mxu0 %v3015_v60 }
  0x4e   :  { %2651 = vmatprep.subr.bf16.mxu0 %v3208_v0 }
  0x51   :  { %2652 = vmatpush3.bf16.msra.mxu0 %v3016_v5 }
  0x52   :  { %2677 = vmatprep.subr.bf16.mxu0 %v3208_v0 }
 0x107   :  { %v146_v21 = vpop.f32.mrb[0].mxu0 }
 0x108   :  { %v147_v22 = vadd.f32 %v2250_v19, %v146_v21  ;;  %v2615_v23 = vpop.f32.mrb[1].mxu0 }
 0x109   :  { %v149_v24 = vpop.f32.mrb[2].mxu0 }
 0x10a   :  { %v152_v25 = vadd.f32 %v147_v22, %v34_v20  ;;  %v2616_v26 = vpop.f32.mrb[3].mxu0 }
 0x10c   :  { %v153_v28 = vpack.c.bf16 %v152_v25, %v152_v25 }
 0x10e   :  { %2634 = vmatmul.mubr.bf16.vlgmr.msra.gmra.mrb[0].mxu1 %v153_v28 }
 0x10f   :  { %2658 = vmatpush3.bf16.msra.mxu1 %v3001_v27  ;;  %2673 = vmatprep.mubr.msk.bf16.mxu1 %vm3209_vm0, %v3208_v0 }
 0x110   :  { %2659 = vmatprep.subr.bf16.mxu1 %v3208_v0 }
 0x113   :  { %2660 = vmatpush3.bf16.msra.mxu1 %v3002_v29 }
 0x114   :  { %2661 = vmatprep.subr.bf16.mxu1 %v3208_v0 }
 0x117   :  { %2662 = vmatpush3.bf16.msra.mxu1 %v3003_v30 }
 0x118   :  { %2663 = vmatprep.subr.bf16.mxu1 %v3208_v0 }
 0x11b   :  { %2664 = vmatpush3.bf16.msra.mxu1 %v3004_v31 }
 0x11c   :  { %2665 = vmatprep.subr.bf16.mxu1 %v3208_v0 }
 0x11f   :  { %2666 = vmatpush3.bf16.msra.mxu1 %v3005_v32 }
 0x120   :  { %2667 = vmatprep.subr.bf16.mxu1 %v3208_v0 }
 0x123   :  { %2668 = vmatpush3.bf16.msra.mxu1 %v3006_v33 }
 0x124   :  { %2669 = vmatprep.subr.bf16.mxu1 %v3208_v0 }
 0x127   :  { %2670 = vmatpush3.bf16.msra.mxu1 %v3007_v35 }
 0x128   :  { %2671 = vmatprep.subr.bf16.mxu1 %v3208_v0 }
 0x12b   :  { %2672 = vmatpush3.bf16.msra.mxu1 %v3008_v37 }
 0x12c   :  { %2697 = vmatprep.subr.bf16.mxu1 %v3208_v0 }
 0x12e   :  { %2674 = vmatmul.mubr.msk.bf16.vlgmr.msra.gmra.mrb[4].mxu1 %vm2286_vm2, %v3210_v38 }
 0x12f   :  { %2713 = vmatprep.mubr.msk.bf16.mxu1 %vm3209_vm0, %v3208_v0  ;;  %2698 = vmatpush3.bf16.msra.mxu1 %v3009_v50  ;;  %v2249_v50 = vld [vmem:[%s3683_s1 + $0x18] sm:$0xff] }
 0x130   :  { %2699 = vmatprep.subr.bf16.mxu1 %v3208_v0 }
 0x133   :  { %2700 = vmatpush3.bf16.msra.mxu1 %v3010_v52 }
 0x134   :  { %2701 = vmatprep.subr.bf16.mxu1 %v3208_v0 }
 0x137   :  { %2702 = vmatpush3.bf16.msra.mxu1 %v3011_v56 }
 0x138   :  { %2703 = vmatprep.subr.bf16.mxu1 %v3208_v0 }
 0x13b   :  { %2704 = vmatpush3.bf16.msra.mxu1 %v3012_v57 }
 0x13c   :  { %2705 = vmatprep.subr.bf16.mxu1 %v3208_v0 }
 0x13f   :  { %2706 = vmatpush3.bf16.msra.mxu1 %v3013_v58 }
 0x140   :  { %2707 = vmatprep.subr.bf16.mxu1 %v3208_v0 }
 0x143   :  { %2708 = vmatpush3.bf16.msra.mxu1 %v3014_v59 }
 0x144   :  { %2709 = vmatprep.subr.bf16.mxu1 %v3208_v0 }
 0x147   :  { %2710 = vmatpush3.bf16.msra.mxu1 %v3015_v60 }
 0x148   :  { %2711 = vmatprep.subr.bf16.mxu1 %v3208_v0 }
 0x14b   :  { %2712 = vmatpush3.bf16.msra.mxu1 %v3016_v5 }
 0x14c   :  { %2737 = vmatprep.subr.bf16.mxu1 %v3208_v0 }
 0x1e1   :  { %v258_v40 = vpop.f32.mrb[0].mxu1 }
 0x1e2   :  { %v259_v41 = vadd.f32 %v3328_v39, %v258_v40  ;;  %v2635_v42 = vpop.f32.mrb[1].mxu1 }
 0x1e3   :  { %v261_v43 = vpop.f32.mrb[2].mxu1 }
 0x1e4   :  { %v264_v44 = vmul.f32 0.5, %v259_v41  ;;  %v2636_v45 = vpop.f32.mrb[3].mxu1 }
 0x1e6   :  { %3121 = vtanh.f32 %v264_v44 }
 0x1e7   :  { %3123 = vtanh.f32 %v259_v41 }
 0x1f0   :  { %v3122_v46 = vpop.eup %3121 }
 0x1f1   :  { %v266_v47 = vmul.f32 0.5, %v3122_v46  ;;  %v3124_v49 = vpop.eup %3123 }
 0x1f3   :  { %v267_v48 = vadd.f32 0.5, %v266_v47 }
 0x1f5   :  { %271 = vrot.lane.b32.xlu1 %v267_v48, %s3206_s25  ;;  %269 = vrot.lane.b32.xlu0 %v267_v48, %s3211_s9  ;;  %v275_v1 = vmul.f32 %v2248_v62, %v267_v48  ;;  %v3018_v62 = vld [vmem:[#allocation2 + $0xc8] sm:$0xff]  }
 0x1f9   :  { %273 = vrot.lane.b32.xlu0 %v3124_v49, %s3212_s10 }
 0x201   :  { %v516_v51 = vpop.f32.mrb[4].mxu1 }
 0x202   :  { %v2675_v53 = vpop.f32.mrb[5].mxu1 }
 0x203   :  { %v519_v54 = vpop.f32.mrb[6].mxu1 }
 0x204   :  { %v2676_v55 = vpop.f32.mrb[7].mxu1 }
 0x267   :  { %v270_v61 = vpop.permute.xlu0 %269  ;;  %v272_v9 = vpop.permute.xlu1 %271 }
 0x26b   :  { %v274_v63 = vpop.permute.xlu0 %273 }
 0x26c   :  { %v276_v2 = vmul.f32 %v274_v63, %v270_v61  ;;  %v3017_v61 = vld [vmem:[#allocation2 + $0xc0] sm:$0xff]  }
 0x26e   :  { %v3351_v3 = vadd.f32 %v276_v2, %v275_v1  ;;  %v3019_v1 = vld [vmem:[#allocation2 + $0xd0] sm:$0xff]  }
 0x270   :  { %3125 = vtanh.f32 %v3351_v3 }
 0x27a   :  { %v3126_v7 = vpop.eup %3125 }
 0x27b   :  { %v280_v11 = vmul.f32 %v3126_v7, %v272_v9 }
 0x27d   :  { %v281_v13 = vsel %vm278_vm3, %v280_v11, 0.0  ;;  %v3020_v11 = vld [vmem:[#allocation2 + $0xd8] sm:$0xff]  }
 0x27e   :  { %v522_v14 = vadd.f32 %v516_v51, %v281_v13  ;;  %282 = vrot.lane.b32.xlu1 %v281_v13, %s3212_s10  ;;  %v3021_v13 = vld [vmem:[#allocation2 + $0xe0] sm:$0xff]  }
 0x2f0   :  { %v283_v19 = vpop.permute.xlu1 %282 }
 0x2f1   :  { %v284_v20 = vadd.f32 %v2247_v16, %v283_v19  ;;  %v3022_v16 = vld [vmem:[#allocation2 + $0xe8] sm:$0xff]  }
 0x2f3   :  { %v285_v21 = vpack.c.bf16 %v284_v20, %v284_v20 }
 0x2f5   :  { %2654 = vmatmul.mubr.bf16.vlgmr.msra.gmra.mrb[4].mxu0 %v285_v21  ;;  %v3023_v21 = vld [vmem:[#allocation2 + $0xf0] sm:$0xff]  }
 0x2f6   :  { %2678 = vmatpush3.bf16.msra.mxu0 %v3260_v4  ;;  %2693 = vmatprep.mubr.msk.bf16.mxu0 %vm3209_vm0, %v3208_v0  ;;  %v523_v4 = vpack.c.bf16 %v522_v14, %v522_v14 }
 0x2f7   :  { %2679 = vmatprep.subr.bf16.mxu0 %v3208_v0 }
 0x2fa   :  { %2680 = vmatpush3.bf16.msra.mxu0 %v3264_v6 }
 0x2fb   :  { %2681 = vmatprep.subr.bf16.mxu0 %v3208_v0 }
 0x2fe   :  { %2682 = vmatpush3.bf16.msra.mxu0 %v3267_v8 }
 0x2ff   :  { %2683 = vmatprep.subr.bf16.mxu0 %v3208_v0 }
 0x302   :  { %2684 = vmatpush3.bf16.msra.mxu0 %v3272_v10 }
 0x303   :  { %2685 = vmatprep.subr.bf16.mxu0 %v3208_v0 }
 0x306   :  { %2686 = vmatpush3.bf16.msra.mxu0 %v3277_v12 }
 0x307   :  { %2687 = vmatprep.subr.bf16.mxu0 %v3208_v0 }
 0x30a   :  { %2688 = vmatpush3.bf16.msra.mxu0 %v3285_v15  ;;  %v3386_v15 = vld [vmem:[%s3685_s3 + $0x2] ss:$0 sm:$0xff] }
 0x30b   :  { %2689 = vmatprep.subr.bf16.mxu0 %v3208_v0 }
 0x30e   :  { %2690 = vmatpush3.bf16.msra.mxu0 %v3295_v17 }
 0x30f   :  { %2691 = vmatprep.subr.bf16.mxu0 %v3208_v0 }
 0x312   :  { %2692 = vmatpush3.bf16.msra.mxu0 %v3299_v18 }
 0x313   :  { %2717 = vmatprep.subr.bf16.mxu0 %v3208_v0 }
 0x315   :  { %2694 = vmatmul.mubr.bf16.vlgmr.msra.gmra.mrb[8].mxu0 %v523_v4 }
 0x316   :  { %2733 = vmatprep.mubr.msk.bf16.mxu0 %vm3209_vm0, %v3208_v0  ;;  %2718 = vmatpush3.bf16.msra.mxu0 %v3017_v61 }
 0x317   :  { %2719 = vmatprep.subr.bf16.mxu0 %v3208_v0 }
 0x31a   :  { %2720 = vmatpush3.bf16.msra.mxu0 %v3018_v62 }
 0x31b   :  { %2721 = vmatprep.subr.bf16.mxu0 %v3208_v0 }
 0x31e   :  { %2722 = vmatpush3.bf16.msra.mxu0 %v3019_v1 }
 0x31f   :  { %2723 = vmatprep.subr.bf16.mxu0 %v3208_v0 }
 0x322   :  { %2724 = vmatpush3.bf16.msra.mxu0 %v3020_v11 }
 0x323   :  { %2725 = vmatprep.subr.bf16.mxu0 %v3208_v0 }
 0x326   :  { %2726 = vmatpush3.bf16.msra.mxu0 %v3021_v13 }
 0x327   :  { %2727 = vmatprep.subr.bf16.mxu0 %v3208_v0 }
 0x32a   :  { %2728 = vmatpush3.bf16.msra.mxu0 %v3022_v16 }
 0x32b   :  { %2729 = vmatprep.subr.bf16.mxu0 %v3208_v0 }
 0x32e   :  { %2730 = vmatpush3.bf16.msra.mxu0 %v3023_v21 }
 0x32f   :  { %2731 = vmatprep.subr.bf16.mxu0 %v3208_v0 }
 0x3c8   :  { %v390_v6 = vpop.f32.mrb[4].mxu0 }
 0x3c9   :  { %v2655_v8 = vpop.f32.mrb[5].mxu0  ;;  %v391_v17 = vadd.f32 %v3386_v15, %v390_v6  ;;  %v3024_v6 = vld [vmem:[#allocation2 + $0xf8] sm:$0xff]  }
 0x3ca   :  { %v393_v10 = vpop.f32.mrb[6].mxu0  ;;  %2732 = vmatpush3.bf16.msra.mxu0 %v3024_v6 }
 0x3cb   :  { %v2656_v12 = vpop.f32.mrb[7].mxu0  ;;  %v396_v22 = vmul.f32 0.5, %v391_v17  ;;  %2757 = vmatprep.subr.bf16.mxu0 %v3208_v0 }
 0x3cd   :  { %3127 = vtanh.f32 %v396_v22 }
 0x3d7   :  { %v3128_v28 = vpop.eup %3127 }
 0x3d8   :  { %v398_v29 = vmul.f32 0.5, %v3128_v28 }
 0x3da   :  { %v399_v32 = vadd.f32 0.5, %v398_v29 }
 0x3dc   :  { %v407_v52 = vmul.f32 %v2249_v50, %v399_v32 }
 0x3e8   :  { %v558_v18 = vpop.f32.mrb[8].mxu0 }
 0x3e9   :  { %v559_v23 = vadd.f32 %v3328_v39, %v558_v18  ;;  %v2695_v24 = vpop.f32.mrb[9].mxu0 }
 0x3ea   :  { %v561_v25 = vpop.f32.mrb[10].mxu0 }
 0x3eb   :  { %v564_v26 = vmul.f32 0.5, %v559_v23  ;;  %3129 = vtanh.f32 %v559_v23  ;;  %v2696_v27 = vpop.f32.mrb[11].mxu0 }
 0x3ec   :  { %v3446_v27 = vld [vmem:[%s3685_s3 + $0x3] ss:$0 sm:$0xff] }
 0x3ed   :  { %3131 = vtanh.f32 %v564_v26 }
 0x3ee   :  { %3133 = vtanh.f32 %v391_v17 }
 0x3f5   :  { %v3130_v30 = vpop.eup %3129 }
 0x3f6   :  { %573 = vrot.lane.b32.xlu1 %v3130_v30, %s3212_s10 }
 0x3f7   :  { %v3132_v31 = vpop.eup %3131 }
 0x3f8   :  { %v566_v33 = vmul.f32 0.5, %v3132_v31  ;;  %v3134_v35 = vpop.eup %3133 }
 0x3fa   :  { %401 = vrot.lane.b32.xlu1 %v399_v32, %s3211_s9  ;;  %v567_v34 = vadd.f32 0.5, %v566_v33 }
 0x3fc   :  { %569 = vrot.lane.b32.xlu0 %v567_v34, %s3211_s9  ;;  %v575_v41 = vmul.f32 %v567_v34, %v3351_v3 }
 0x3fe   :  { %403 = vrot.lane.b32.xlu1 %v399_v32, %s3206_s25 }
 0x400   :  { %571 = vrot.lane.b32.xlu0 %v567_v34, %s3206_s25 }
 0x404   :  { %405 = vrot.lane.b32.xlu0 %v3134_v35, %s3212_s10 }
 0x468   :  { %v574_v37 = vpop.permute.xlu1 %573 }
 0x46c   :  { %v402_v49 = vpop.permute.xlu1 %401 }
 0x46e   :  { %v570_v40 = vpop.permute.xlu0 %569 }
 0x46f   :  { %v576_v42 = vmul.f32 %v574_v37, %v570_v40  ;;  %v3025_v40 = vld [vmem:[#allocation2 + $0x100] sm:$0xff]  }
 0x470   :  { %v404_v55 = vpop.permute.xlu1 %403 }
 0x471   :  { %v3397_v43 = vadd.f32 %v576_v42, %v575_v41  ;;  %v3026_v41 = vld [vmem:[#allocation2 + $0x108] sm:$0xff]   ;;  %v3027_v42 = vld [vmem:[#allocation2 + $0x110] sm:$0xff]  }
 0x472   :  { %v572_v45 = vpop.permute.xlu0 %571 }
 0x473   :  { %3135 = vtanh.f32 %v3397_v43 }
 0x476   :  { %v406_v48 = vpop.permute.xlu0 %405 }
 0x477   :  { %v408_v51 = vmul.f32 %v406_v48, %v402_v49  ;;  %v3031_v48 = vld [vmem:[#allocation2 + $0x130] sm:$0xff]  }
 0x479   :  { %v409_v53 = vadd.f32 %v408_v51, %v407_v52 }
 0x47b   :  { %3137 = vtanh.f32 %v409_v53 }
 0x47d   :  { %v3136_v44 = vpop.eup %3135 }
 0x47e   :  { %v579_v46 = vmul.f32 %v3136_v44, %v572_v45  ;;  %v3028_v44 = vld [vmem:[#allocation2 + $0x118] sm:$0xff]   ;;  %v3029_v45 = vld [vmem:[#allocation2 + $0x120] sm:$0xff]  }
 0x480   :  { %v3402_v47 = vsel %vm278_vm3, %v579_v46, 0.0  ;;  %v3030_v46 = vld [vmem:[#allocation2 + $0x128] sm:$0xff]  }
 0x481   :  { %581 = vrot.lane.b32.xlu0 %v3402_v47, %s3212_s10 }
 0x485   :  { %v3138_v54 = vpop.eup %3137 }
 0x486   :  { %v411_v56 = vmul.f32 %v3138_v54, %v404_v55  ;;  %v3033_v54 = vld [vmem:[#allocation2 + $0x40] sm:$0xff]   ;;  %v3034_v55 = vld [vmem:[#allocation2 + $0x48] sm:$0xff]  }
 0x488   :  { %v412_v57 = vsel %vm278_vm3, %v411_v56, 0.0  ;;  %v3035_v56 = vld [vmem:[#allocation2 + $0x50] sm:$0xff]  }
 0x4f3   :  { %v582_v58 = vpop.permute.xlu0 %581 }
 0x4f4   :  { %v583_v59 = vadd.f32 %v582_v58, %v412_v57  ;;  %v3036_v57 = vld [vmem:[#allocation2 + $0x58] sm:$0xff]   ;;  %v3037_v58 = vld [vmem:[#allocation2 + $0x60] sm:$0xff]  }
 0x4f6   :  { %v584_v60 = vpack.c.bf16 %v583_v59, %v583_v59  ;;  %v3038_v59 = vld [vmem:[#allocation2 + $0x68] sm:$0xff]  }
 0x4f8   :  { %2714 = vmatmul.mubr.bf16.vlgmr.msra.gmra.mrb[8].mxu1 %v584_v60  ;;  %v3039_v60 = vld [vmem:[#allocation2 + $0x70] sm:$0xff]  }
 0x4f9   :  { %2753 = vmatprep.mubr.msk.bf16.mxu1 %vm3209_vm0, %v3208_v0  ;;  %2738 = vmatpush3.bf16.msra.mxu1 %v3025_v40 }
 0x4fa   :  { %2739 = vmatprep.subr.bf16.mxu1 %v3208_v0 }
 0x4fd   :  { %2740 = vmatpush3.bf16.msra.mxu1 %v3026_v41 }
 0x4fe   :  { %2741 = vmatprep.subr.bf16.mxu1 %v3208_v0 }
 0x501   :  { %2742 = vmatpush3.bf16.msra.mxu1 %v3027_v42 }
 0x502   :  { %2743 = vmatprep.subr.bf16.mxu1 %v3208_v0 }
 0x505   :  { %2744 = vmatpush3.bf16.msra.mxu1 %v3028_v44 }
 0x506   :  { %2745 = vmatprep.subr.bf16.mxu1 %v3208_v0 }
 0x509   :  { %2746 = vmatpush3.bf16.msra.mxu1 %v3029_v45 }
 0x50a   :  { %2747 = vmatprep.subr.bf16.mxu1 %v3208_v0 }
 0x50d   :  { %2748 = vmatpush3.bf16.msra.mxu1 %v3030_v46 }
 0x50e   :  { %2749 = vmatprep.subr.bf16.mxu1 %v3208_v0 }
 0x511   :  { %2750 = vmatpush3.bf16.msra.mxu1 %v3031_v48  ;;  %v3049_v48 = vld [vmem:[#allocation2 + $0xc0] sm:$0xff]  }
 0x512   :  { %2751 = vmatprep.subr.bf16.mxu1 %v3208_v0 }
 0x5cb   :  { %v619_v63 = vpop.f32.mrb[8].mxu1 }
 0x5cc   :  { %v620_v2 = vadd.f32 %v3386_v15, %v619_v63  ;;  %v2715_v3 = vpop.f32.mrb[9].mxu1 }
 0x5cd   :  { %v622_v5 = vpop.f32.mrb[10].mxu1  ;;  %v3040_v3 = vld [vmem:[#allocation2 + $0x78] sm:$0xff]  }
 0x5ce   :  { %v625_v7 = vmul.f32 0.5, %v620_v2  ;;  %3139 = vtanh.f32 %v620_v2  ;;  %v2716_v9 = vpop.f32.mrb[11].mxu1 }
 0x5d0   :  { %3141 = vtanh.f32 %v625_v7 }
 0x5d8   :  { %v3140_v14 = vpop.eup %3139 }
 0x5d9   :  { %634 = vrot.lane.b32.xlu0 %v3140_v14, %s3212_s10 }
 0x5da   :  { %v3142_v19 = vpop.eup %3141 }
 0x5db   :  { %v627_v20 = vmul.f32 0.5, %v3142_v19 }
 0x5dd   :  { %v628_v4 = vadd.f32 0.5, %v627_v20 }
 0x5df   :  { %630 = vrot.lane.b32.xlu1 %v628_v4, %s3211_s9  ;;  %v636_v12 = vmul.f32 %v628_v4, %v409_v53  ;;  %v3032_v53 = vld [vmem:[#allocation2 + $0x138] sm:$0xff]  }
 0x5e0   :  { %2752 = vmatpush3.bf16.msra.mxu1 %v3032_v53 }
 0x5e1   :  { %2777 = vmatprep.subr.bf16.mxu1 %v3208_v0 }
 0x5e3   :  { %632 = vrot.lane.b32.xlu1 %v628_v4, %s3206_s25 }
 0x64b   :  { %v635_v8 = vpop.permute.xlu0 %634 }
 0x651   :  { %v631_v10 = vpop.permute.xlu1 %630 }
 0x652   :  { %v637_v17 = vmul.f32 %v635_v8, %v631_v10 }
 0x654   :  { %v3425_v22 = vadd.f32 %v637_v17, %v636_v12  ;;  %v3041_v17 = vld [vmem:[#allocation2 + $0x80] sm:$0xff]  }
 0x655   :  { %v633_v23 = vpop.permute.xlu1 %632 }
 0x656   :  { %3143 = vtanh.f32 %v3425_v22 }
 0x660   :  { %v3144_v18 = vpop.eup %3143 }
 0x661   :  { %v3428_v24 = vmul.f32 %v3144_v18, %v633_v23  ;;  %v3042_v18 = vld [vmem:[#allocation2 + $0x88] sm:$0xff]   ;;  %v3044_v23 = vld [vmem:[#allocation2 + $0x98] sm:$0xff]  }
 0x663   :  { %v2298_v26 = vpack.c.bf16 %v3428_v24, %v3428_v24 }
 0x665   :  { %2734 = vmatmul.mubr.msk.bf16.vlgmr.msra.gmra.mrb[12].mxu0 %vm3433_vm4, %v2298_v26  ;;  %v3045_v26 = vld [vmem:[#allocation2 + $0xa0] sm:$0xff]  }
 0x666   :  { %2773 = vmatprep.mubr.msk.bf16.mxu0 %vm3209_vm0, %v3208_v0  ;;  %2758 = vmatpush3.bf16.msra.mxu0 %v3033_v54 }
 0x667   :  { %2759 = vmatprep.subr.bf16.mxu0 %v3208_v0 }
 0x66a   :  { %2760 = vmatpush3.bf16.msra.mxu0 %v3034_v55 }
 0x66b   :  { %2761 = vmatprep.subr.bf16.mxu0 %v3208_v0 }
 0x66e   :  { %2762 = vmatpush3.bf16.msra.mxu0 %v3035_v56  ;;  %v3052_v56 = vld [vmem:[#allocation2 + $0xd8] sm:$0xff]  }
 0x66f   :  { %2763 = vmatprep.subr.bf16.mxu0 %v3208_v0 }
 0x672   :  { %2764 = vmatpush3.bf16.msra.mxu0 %v3036_v57  ;;  %v3053_v57 = vld [vmem:[#allocation2 + $0xe0] sm:$0xff]  }
 0x673   :  { %2765 = vmatprep.subr.bf16.mxu0 %v3208_v0 }
 0x676   :  { %2766 = vmatpush3.bf16.msra.mxu0 %v3037_v58 }
 0x677   :  { %2767 = vmatprep.subr.bf16.mxu0 %v3208_v0 }
 0x67a   :  { %2768 = vmatpush3.bf16.msra.mxu0 %v3038_v59  ;;  %v3054_v59 = vld [vmem:[#allocation2 + $0xe8] sm:$0xff]  }
 0x67b   :  { %2769 = vmatprep.subr.bf16.mxu0 %v3208_v0 }
 0x67e   :  { %2770 = vmatpush3.bf16.msra.mxu0 %v3039_v60 }
 0x67f   :  { %2771 = vmatprep.subr.bf16.mxu0 %v3208_v0 }
 0x682   :  { %2772 = vmatpush3.bf16.msra.mxu0 %v3040_v3 }
 0x683   :  { %2797 = vmatprep.subr.bf16.mxu0 %v3208_v0 }
 0x738   :  { %v747_v28 = vpop.f32.mrb[12].mxu0 }
 0x739   :  { %v748_v29 = vadd.f32 %v3446_v27, %v747_v28  ;;  %v2735_v30 = vpop.f32.mrb[13].mxu0  ;;  %v3046_v28 = vld [vmem:[#allocation2 + $0xa8] sm:$0xff]  }
 0x73a   :  { %v750_v31 = vpop.f32.mrb[14].mxu0 }
 0x73b   :  { %753 = vst [vmem:[%s3686_s4] sm:$0xff] %v748_v29  ;;  %754 = vmax.xlane.f32.xlu0 %v748_v29  ;;  %v2736_v32 = vpop.f32.mrb[15].mxu0 }
 0x7c8   :  { %v755_v33 = vpop.xlane.xlu0 %754 }
 0x7c9   :  { %vm756_vm5 = vcmp.eq.f32.partialorder %v748_v29, %v755_v33  ;;  %v3047_v29 = vld [vmem:[#allocation2 + $0xb0] sm:$0xff]  }
 0x7ca   :  { %v757_v34 = vsel %vm756_vm5, %v3317_v36, 128 }
 0x7cb   :  { %v759_v35 = vshra.s32 %v757_v34, 16  ;;  %v758_v49 = vand.u32 65535, %v757_v34 }
 0x7cd   :  { %v761_v37 = vcvt.s32.f32 %v759_v35  ;;  %v760_v51 = vcvt.s32.f32 %v758_v49  ;;  %v3048_v35 = vld [vmem:[#allocation2 + $0xb8] sm:$0xff]   ;;  %v3050_v49 = vld [vmem:[#allocation2 + $0xc8] sm:$0xff]  }
 0x7cf   :  { %762 = vmin.xlane.f32.xlu1 %v761_v37 }
 0x85c   :  { %v763_v50 = vpop.xlane.xlu1 %762 }
 0x85d   :  { %vm764_vm6 = vcmp.eq.f32.partialorder %v761_v37, %v763_v50  ;;  %v769_v61 = vcvt.f32.s32 %v763_v50 }
 0x85e   :  { %v765_v52 = vsel %vm764_vm6, %v760_v51, inf  ;;  %v3051_v51 = vld [vmem:[#allocation2 + $0xd0] sm:$0xff]  }
 0x85f   :  { %766 = vmin.xlane.f32.xlu0 %v765_v52  ;;  %v770_v63 = vshll.u32 %v769_v61, 16  ;;  %v3055_v61 = vld [vmem:[#allocation2 + $0xf0] sm:$0xff]  }
 0x8ec   :  { %v767_v62 = vpop.xlane.xlu0 %766 }
 0x8ed   :  { %v768_v1 = vcvt.f32.s32 %v767_v62 }
 0x8ef   :  { %v771_v2 = vadd.s32 %v770_v63, %v768_v1  ;;  %v3056_v63 = vld [vmem:[#allocation2 + $0xf8] sm:$0xff]  }
 0x8f1   :  { %vm772_vm7 = vcmp.eq.s32.totalorder %v3317_v36, %v771_v2 }
 0x8f2   :  { %vm2309_vm8 = vmpackc.low %vm772_vm7, %vm772_vm7 }
 0x8f3   :  { %2754 = vmatmul.mubr.msk.bf16.vlgmr.msra.gmra.mrb[12].mxu1 %vm2309_vm8, %v3210_v38 }
 0x8f4   :  { %2793 = vmatprep.mubr.msk.bf16.mxu1 %vm3209_vm0, %v3208_v0  ;;  %2778 = vmatpush3.bf16.msra.mxu1 %v3041_v17  ;;  %v3059_v17 = vld [vmem:[#allocation2 + $0x110] sm:$0xff]  }
 0x8f5   :  { %2779 = vmatprep.subr.bf16.mxu1 %v3208_v0 }
 0x8f8   :  { %2780 = vmatpush3.bf16.msra.mxu1 %v3042_v18  ;;  %v3060_v18 = vld [vmem:[#allocation2 + $0x118] sm:$0xff]  }
 0x8f9   :  { %2781 = vmatprep.subr.bf16.mxu1 %v3208_v0 }
 0x9c6   :  { %v874_v5 = vpop.f32.mrb[12].mxu1 }
 0x9c7   :  { %v880_v7 = vadd.f32 %v874_v5, %v3402_v47  ;;  %v2755_v9 = vpop.f32.mrb[13].mxu1 }
 0x9c8   :  { %v877_v11 = vpop.f32.mrb[14].mxu1 }
 0x9c9   :  { %v881_v13 = vpack.c.bf16 %v880_v7, %v880_v7  ;;  %v2756_v14 = vpop.f32.mrb[15].mxu1 }
 0x9cb   :  { %2774 = vmatmul.mubr.bf16.vlgmr.msra.gmra.mrb[16].mxu0 %v881_v13 }
 0x9cc   :  { %2813 = vmatprep.mubr.msk.bf16.mxu0 %vm3209_vm0, %v3208_v0  ;;  %2798 = vmatpush3.bf16.msra.mxu0 %v3049_v48 }
 0x9cd   :  { %2799 = vmatprep.subr.bf16.mxu0 %v3208_v0 }
 0x9d0   :  { %2800 = vmatpush3.bf16.msra.mxu0 %v3050_v49 }
 0x9d1   :  { %2801 = vmatprep.subr.bf16.mxu0 %v3208_v0 }
 0x9d4   :  { %2802 = vmatpush3.bf16.msra.mxu0 %v3051_v51  ;;  %v3072_v51 = vld [vmem:[#allocation2 + $0x78] sm:$0xff]  }
 0x9d5   :  { %2803 = vmatprep.subr.bf16.mxu0 %v3208_v0 }
 0x9d8   :  { %2804 = vmatpush3.bf16.msra.mxu0 %v3052_v56 }
 0x9d9   :  { %2805 = vmatprep.subr.bf16.mxu0 %v3208_v0 }
 0x9dc   :  { %2806 = vmatpush3.bf16.msra.mxu0 %v3053_v57  ;;  %v3558_v57 = vld [vmem:[%s3685_s3 + $0x1] ss:$0 sm:$0xff] }
 0x9dd   :  { %2807 = vmatprep.subr.bf16.mxu0 %v3208_v0 }
 0x9e0   :  { %2808 = vmatpush3.bf16.msra.mxu0 %v3054_v59 }
 0x9e1   :  { %2809 = vmatprep.subr.bf16.mxu0 %v3208_v0 }
 0x9e4   :  { %2810 = vmatpush3.bf16.msra.mxu0 %v3055_v61 }
 0x9e5   :  { %2811 = vmatprep.subr.bf16.mxu0 %v3208_v0 }
 0x9e8   :  { %2812 = vmatpush3.bf16.msra.mxu0 %v3056_v63 }
 0x9e9   :  { %2837 = vmatprep.subr.bf16.mxu0 %v3208_v0 }
 0xa9e   :  { %v985_v16 = vpop.f32.mrb[16].mxu0 }
 0xa9f   :  { %v986_v19 = vadd.f32 %v3328_v39, %v985_v16  ;;  %v2775_v20 = vpop.f32.mrb[17].mxu0  ;;  %v3043_v39 = vld [vmem:[#allocation2 + $0x90] sm:$0xff]  }
 0xaa0   :  { %v988_v21 = vpop.f32.mrb[18].mxu0  ;;  %2782 = vmatpush3.bf16.msra.mxu1 %v3043_v39  ;;  %v3061_v39 = vld [vmem:[#allocation2 + $0x120] sm:$0xff]  }
 0xaa1   :  { %v991_v4 = vmul.f32 0.5, %v986_v19  ;;  %3145 = vtanh.f32 %v986_v19  ;;  %v2776_v6 = vpop.f32.mrb[19].mxu0  ;;  %2783 = vmatprep.subr.bf16.mxu1 %v3208_v0 }
 0xaa3   :  { %3147 = vtanh.f32 %v991_v4 }
 0xaa4   :  { %2784 = vmatpush3.bf16.msra.mxu1 %v3044_v23  ;;  %v3062_v23 = vld [vmem:[#allocation2 + $0x128] sm:$0xff]  }
 0xaa5   :  { %2785 = vmatprep.subr.bf16.mxu1 %v3208_v0 }
 0xaa8   :  { %2786 = vmatpush3.bf16.msra.mxu1 %v3045_v26  ;;  %v3063_v26 = vld [vmem:[#allocation2 + $0x130] sm:$0xff]  }
 0xaa9   :  { %2787 = vmatprep.subr.bf16.mxu1 %v3208_v0 }
 0xaab   :  { %v3146_v8 = vpop.eup %3145 }
 0xaac   :  { %1000 = vrot.lane.b32.xlu1 %v3146_v8, %s3212_s10  ;;  %2788 = vmatpush3.bf16.msra.mxu1 %v3046_v28 }
 0xaad   :  { %v3148_v47 = vpop.eup %3147  ;;  %2789 = vmatprep.subr.bf16.mxu1 %v3208_v0 }
 0xaae   :  { %v993_v10 = vmul.f32 0.5, %v3148_v47 }
 0xab0   :  { %v994_v12 = vadd.f32 0.5, %v993_v10  ;;  %2790 = vmatpush3.bf16.msra.mxu1 %v3047_v29  ;;  %v3057_v10 = vld [vmem:[#allocation2 + $0x100] sm:$0xff]  }
 0xab1   :  { %2791 = vmatprep.subr.bf16.mxu1 %v3208_v0 }
 0xab2   :  { %998 = vrot.lane.b32.xlu1 %v994_v12, %s3206_s25  ;;  %996 = vrot.lane.b32.xlu0 %v994_v12, %s3211_s9  ;;  %v1002_v32 = vmul.f32 %v994_v12, %v3397_v43  ;;  %v641_v43 = vsel %vm278_vm3, %v3428_v24, 0.0  ;;  %v3058_v12 = vld [vmem:[#allocation2 + $0x108] sm:$0xff]  }
 0xab4   :  { %2792 = vmatpush3.bf16.msra.mxu1 %v3048_v35  ;;  %v3066_v35 = vld [vmem:[#allocation2 + $0x48] sm:$0xff]  }
 0xab5   :  { %2817 = vmatprep.subr.bf16.mxu1 %v3208_v0 }
 0xb1e   :  { %v1001_v30 = vpop.permute.xlu1 %1000 }
 0xb24   :  { %v997_v31 = vpop.permute.xlu0 %996  ;;  %v999_v40 = vpop.permute.xlu1 %998 }
 0xb25   :  { %v1003_v33 = vmul.f32 %v1001_v30, %v997_v31 }
 0xb27   :  { %v3488_v34 = vadd.f32 %v1003_v33, %v1002_v32  ;;  %v3064_v32 = vld [vmem:[#allocation2 + $0x138] sm:$0xff]   ;;  %v3065_v33 = vld [vmem:[#allocation2 + $0x40] sm:$0xff]  }
 0xb29   :  { %3149 = vtanh.f32 %v3488_v34 }
 0xb33   :  { %v3150_v37 = vpop.eup %3149 }
 0xb34   :  { %v1006_v41 = vmul.f32 %v3150_v37, %v999_v40  ;;  %v3067_v37 = vld [vmem:[#allocation2 + $0x50] sm:$0xff]   ;;  %v3068_v40 = vld [vmem:[#allocation2 + $0x58] sm:$0xff]  }
 0xb36   :  { %v3494_v42 = vsel %vm278_vm3, %v1006_v41, 0.0  ;;  %v3069_v41 = vld [vmem:[#allocation2 + $0x60] sm:$0xff]  }
 0xb37   :  { %1008 = vrot.lane.b32.xlu0 %v3494_v42, %s3212_s10 }
 0xba9   :  { %v1009_v44 = vpop.permute.xlu0 %1008 }
 0xbaa   :  { %v1010_v45 = vadd.f32 %v1009_v44, %v641_v43  ;;  %v3070_v43 = vld [vmem:[#allocation2 + $0x68] sm:$0xff]   ;;  %v3071_v44 = vld [vmem:[#allocation2 + $0x70] sm:$0xff]  }
 0xbac   :  { %v1011_v46 = vpack.c.bf16 %v1010_v45, %v1010_v45 }
 0xbae   :  { %2794 = vmatmul.mubr.bf16.vlgmr.msra.gmra.mrb[16].mxu1 %v1011_v46 }
 0xbaf   :  { %2833 = vmatprep.mubr.msk.bf16.mxu1 %vm3209_vm0, %v3208_v0  ;;  %2818 = vmatpush3.bf16.msra.mxu1 %v3057_v10 }
 0xbb0   :  { %2819 = vmatprep.subr.bf16.mxu1 %v3208_v0 }
 0xbb3   :  { %2820 = vmatpush3.bf16.msra.mxu1 %v3058_v12 }
 0xbb4   :  { %2821 = vmatprep.subr.bf16.mxu1 %v3208_v0 }
 0xbb7   :  { %2822 = vmatpush3.bf16.msra.mxu1 %v3059_v17 }
 0xbb8   :  { %2823 = vmatprep.subr.bf16.mxu1 %v3208_v0 }
 0xbbb   :  { %2824 = vmatpush3.bf16.msra.mxu1 %v3060_v18 }
 0xbbc   :  { %2825 = vmatprep.subr.bf16.mxu1 %v3208_v0 }
 0xbbf   :  { %2826 = vmatpush3.bf16.msra.mxu1 %v3061_v39 }
 0xbc0   :  { %2827 = vmatprep.subr.bf16.mxu1 %v3208_v0 }
 0xbc3   :  { %2828 = vmatpush3.bf16.msra.mxu1 %v3062_v23 }
 0xbc4   :  { %2829 = vmatprep.subr.bf16.mxu1 %v3208_v0 }
 0xbc7   :  { %2830 = vmatpush3.bf16.msra.mxu1 %v3063_v26  ;;  %v3081_v26 = vld [vmem:[#allocation2 + $0xc0] sm:$0xff]  }
 0xbc8   :  { %2831 = vmatprep.subr.bf16.mxu1 %v3208_v0 }
 0xbcb   :  { %2832 = vmatpush3.bf16.msra.mxu1 %v3064_v32 }
 0xbcc   :  { %2857 = vmatprep.subr.bf16.mxu1 %v3208_v0 }
 0xc81   :  { %v1115_v50 = vpop.f32.mrb[16].mxu1 }
 0xc82   :  { %v1116_v52 = vadd.f32 %v3386_v15, %v1115_v50  ;;  %v2795_v24 = vpop.f32.mrb[17].mxu1 }
 0xc83   :  { %v1118_v53 = vpop.f32.mrb[18].mxu1 }
 0xc84   :  { %v1121_v54 = vmul.f32 0.5, %v1116_v52  ;;  %3151 = vtanh.f32 %v1116_v52  ;;  %v2796_v55 = vpop.f32.mrb[19].mxu1 }
 0xc86   :  { %3153 = vtanh.f32 %v1121_v54 }
 0xc8e   :  { %v3152_v58 = vpop.eup %3151 }
 0xc8f   :  { %1130 = vrot.lane.b32.xlu0 %v3152_v58, %s3212_s10 }
 0xc90   :  { %v3154_v15 = vpop.eup %3153 }
 0xc91   :  { %v1123_v60 = vmul.f32 0.5, %v3154_v15 }
 0xc93   :  { %v1124_v62 = vadd.f32 0.5, %v1123_v60 }
 0xc95   :  { %1126 = vrot.lane.b32.xlu1 %v1124_v62, %s3211_s9  ;;  %v1132_v3 = vmul.f32 %v1124_v62, %v3425_v22 }
 0xc99   :  { %1128 = vrot.lane.b32.xlu1 %v1124_v62, %s3206_s25 }
 0xd01   :  { %v1131_v1 = vpop.permute.xlu0 %1130 }
 0xd07   :  { %v1127_v2 = vpop.permute.xlu1 %1126 }
 0xd08   :  { %v1133_v5 = vmul.f32 %v1131_v1, %v1127_v2 }
 0xd0a   :  { %v3516_v7 = vadd.f32 %v1133_v5, %v1132_v3  ;;  %v3073_v3 = vld [vmem:[#allocation2 + $0x80] sm:$0xff]   ;;  %v3074_v5 = vld [vmem:[#allocation2 + $0x88] sm:$0xff]  }
 0xd0b   :  { %v1129_v11 = vpop.permute.xlu1 %1128 }
 0xd0c   :  { %3155 = vtanh.f32 %v3516_v7 }
 0xd16   :  { %v3156_v9 = vpop.eup %3155 }
 0xd17   :  { %v3519_v13 = vmul.f32 %v3156_v9, %v1129_v11  ;;  %v3075_v9 = vld [vmem:[#allocation2 + $0x90] sm:$0xff]   ;;  %v3076_v11 = vld [vmem:[#allocation2 + $0x98] sm:$0xff]  }
 0xd19   :  { %v2339_v14 = vpack.c.bf16 %v3519_v13, %v3519_v13 }
 0xd1b   :  { %2814 = vmatmul.mubr.msk.bf16.vlgmr.msra.gmra.mrb[20].mxu0 %vm3433_vm4, %v2339_v14  ;;  %v3077_v14 = vld [vmem:[#allocation2 + $0xa0] sm:$0xff]  }
 0xd1c   :  { %2853 = vmatprep.mubr.msk.bf16.mxu0 %vm3209_vm0, %v3208_v0  ;;  %2838 = vmatpush3.bf16.msra.mxu0 %v3065_v33 }
 0xd1d   :  { %2839 = vmatprep.subr.bf16.mxu0 %v3208_v0 }
 0xd20   :  { %2840 = vmatpush3.bf16.msra.mxu0 %v3066_v35 }
 0xd21   :  { %2841 = vmatprep.subr.bf16.mxu0 %v3208_v0 }
 0xd24   :  { %2842 = vmatpush3.bf16.msra.mxu0 %v3067_v37 }
 0xd25   :  { %2843 = vmatprep.subr.bf16.mxu0 %v3208_v0 }
 0xd28   :  { %2844 = vmatpush3.bf16.msra.mxu0 %v3068_v40  ;;  %v3084_v40 = vld [vmem:[#allocation2 + $0xd8] sm:$0xff]  }
 0xd29   :  { %2845 = vmatprep.subr.bf16.mxu0 %v3208_v0 }
 0xd2c   :  { %2846 = vmatpush3.bf16.msra.mxu0 %v3069_v41  ;;  %v3085_v41 = vld [vmem:[#allocation2 + $0xe0] sm:$0xff]  }
 0xd2d   :  { %2847 = vmatprep.subr.bf16.mxu0 %v3208_v0 }
 0xd30   :  { %2848 = vmatpush3.bf16.msra.mxu0 %v3070_v43 }
 0xd31   :  { %2849 = vmatprep.subr.bf16.mxu0 %v3208_v0 }
 0xd34   :  { %2850 = vmatpush3.bf16.msra.mxu0 %v3071_v44  ;;  %v3086_v44 = vld [vmem:[#allocation2 + $0xe8] sm:$0xff]  }
 0xd35   :  { %2851 = vmatprep.subr.bf16.mxu0 %v3208_v0 }
 0xd38   :  { %2852 = vmatpush3.bf16.msra.mxu0 %v3072_v51 }
 0xd39   :  { %2877 = vmatprep.subr.bf16.mxu0 %v3208_v0 }
 0xdee   :  { %v1242_v16 = vpop.f32.mrb[20].mxu0 }
 0xdef   :  { %v1243_v22 = vadd.f32 %v3446_v27, %v1242_v16  ;;  %v2815_v19 = vpop.f32.mrb[21].mxu0  ;;  %v3078_v16 = vld [vmem:[#allocation2 + $0xa8] sm:$0xff]  }
 0xdf0   :  { %v1245_v20 = vpop.f32.mrb[22].mxu0 }
 0xdf1   :  { %2341 = vst [vmem:[%s3686_s4 + $0x8] sm:$0xff] %v1243_v22  ;;  %1250 = vmax.xlane.f32.xlu0 %v1243_v22  ;;  %v2816_v21 = vpop.f32.mrb[23].mxu0 }
 0xe7e   :  { %v1251_v4 = vpop.xlane.xlu0 %1250 }
 0xe7f   :  { %vm1252_vm9 = vcmp.eq.f32.partialorder %v1243_v22, %v1251_v4  ;;  %v3079_v22 = vld [vmem:[#allocation2 + $0xb0] sm:$0xff]  }
 0xe80   :  { %v1253_v6 = vsel %vm1252_vm9, %v3317_v36, 128 }
 0xe81   :  { %v1255_v8 = vshra.s32 %v1253_v6, 16  ;;  %v1254_v28 = vand.u32 65535, %v1253_v6 }
 0xe83   :  { %v1257_v47 = vcvt.s32.f32 %v1255_v8  ;;  %v1256_v30 = vcvt.s32.f32 %v1254_v28  ;;  %v3080_v8 = vld [vmem:[#allocation2 + $0xb8] sm:$0xff]   ;;  %v3082_v28 = vld [vmem:[#allocation2 + $0xc8] sm:$0xff]  }
 0xe85   :  { %1258 = vmin.xlane.f32.xlu1 %v1257_v47 }
 0xf12   :  { %v1259_v29 = vpop.xlane.xlu1 %1258 }
 0xf13   :  { %vm1260_vm10 = vcmp.eq.f32.partialorder %v1257_v47, %v1259_v29  ;;  %v1265_v45 = vcvt.f32.s32 %v1259_v29  ;;  %v3592_v29 = vld [vmem:[%s3685_s3 + $0x2] ss:$0 sm:$0xff] }
 0xf14   :  { %v1261_v31 = vsel %vm1260_vm10, %v1256_v30, inf  ;;  %v3083_v30 = vld [vmem:[#allocation2 + $0xd0] sm:$0xff]  }
 0xf15   :  { %1262 = vmin.xlane.f32.xlu0 %v1261_v31  ;;  %v1266_v48 = vshll.u32 %v1265_v45, 16 }
 0xfa2   :  { %v1263_v46 = vpop.xlane.xlu0 %1262 }
 0xfa3   :  { %v1264_v49 = vcvt.f32.s32 %v1263_v46 }
 0xfa5   :  { %v1267_v50 = vadd.s32 %v1266_v48, %v1264_v49  ;;  %v3087_v48 = vld [vmem:[#allocation2 + $0xf0] sm:$0xff]  }
 0xfa7   :  { %vm1268_vm11 = vcmp.eq.s32.totalorder %v3317_v36, %v1267_v50  ;;  %v3088_v50 = vld [vmem:[#allocation2 + $0xf8] sm:$0xff]  }
 0xfa8   :  { %vm2351_vm12 = vmpackc.low %vm1268_vm11, %vm1268_vm11 }
 0xfa9   :  { %2834 = vmatmul.mubr.msk.bf16.vlgmr.msra.gmra.mrb[20].mxu1 %vm2351_vm12, %v3210_v38 }
 0xfaa   :  { %2873 = vmatprep.mubr.msk.bf16.mxu1 %vm3209_vm0, %v3208_v0  ;;  %2858 = vmatpush3.bf16.msra.mxu1 %v3073_v3  ;;  %v3089_v3 = vld [vmem:[#allocation2 + $0x100] sm:$0xff]  }
 0xfab   :  { %2859 = vmatprep.subr.bf16.mxu1 %v3208_v0 }
 0xfae   :  { %2860 = vmatpush3.bf16.msra.mxu1 %v3074_v5  ;;  %v3090_v5 = vld [vmem:[#allocation2 + $0x108] sm:$0xff]  }
 0xfaf   :  { %2861 = vmatprep.subr.bf16.mxu1 %v3208_v0 }
 0xfb2   :  { %2862 = vmatpush3.bf16.msra.mxu1 %v3075_v9  ;;  %v3092_v9 = vld [vmem:[#allocation2 + $0x118] sm:$0xff]  }
 0xfb3   :  { %2863 = vmatprep.subr.bf16.mxu1 %v3208_v0 }
 0xfb6   :  { %2864 = vmatpush3.bf16.msra.mxu1 %v3076_v11  ;;  %v3093_v11 = vld [vmem:[#allocation2 + $0x120] sm:$0xff]  }
 0xfb7   :  { %2865 = vmatprep.subr.bf16.mxu1 %v3208_v0 }
 0xfba   :  { %2866 = vmatpush3.bf16.msra.mxu1 %v3077_v14  ;;  %v3094_v14 = vld [vmem:[#allocation2 + $0x128] sm:$0xff]  }
 0xfbb   :  { %2867 = vmatprep.subr.bf16.mxu1 %v3208_v0 }
 0xfbe   :  { %2868 = vmatpush3.bf16.msra.mxu1 %v3078_v16  ;;  %v3095_v16 = vld [vmem:[#allocation2 + $0x130] sm:$0xff]  }
 0xfbf   :  { %2869 = vmatprep.subr.bf16.mxu1 %v3208_v0 }
 0xfc2   :  { %2870 = vmatpush3.bf16.msra.mxu1 %v3079_v22 }
 0xfc3   :  { %2871 = vmatprep.subr.bf16.mxu1 %v3208_v0 }
 0xfc6   :  { %2872 = vmatpush3.bf16.msra.mxu1 %v3080_v8  ;;  %v3097_v8 = vld [vmem:[#allocation2 + $0x40] sm:$0xff]  }
 0xfc7   :  { %2897 = vmatprep.subr.bf16.mxu1 %v3208_v0 }
0x107c   :  { %v1370_v52 = vpop.f32.mrb[20].mxu1 }
0x107d   :  { %v1376_v24 = vadd.f32 %v1370_v52, %v3494_v42  ;;  %v2835_v53 = vpop.f32.mrb[21].mxu1 }
0x107e   :  { %v1373_v54 = vpop.f32.mrb[22].mxu1 }
0x107f   :  { %v1377_v55 = vpack.c.bf16 %v1376_v24, %v1376_v24  ;;  %v2836_v56 = vpop.f32.mrb[23].mxu1 }
0x1081   :  { %2854 = vmatmul.mubr.bf16.vlgmr.msra.gmra.mrb[24].mxu0 %v1377_v55 }
0x1082   :  { %2893 = vmatprep.mubr.msk.bf16.mxu0 %vm3209_vm0, %v3208_v0  ;;  %2878 = vmatpush3.bf16.msra.mxu0 %v3081_v26 }
0x1083   :  { %2879 = vmatprep.subr.bf16.mxu0 %v3208_v0 }
0x1086   :  { %2880 = vmatpush3.bf16.msra.mxu0 %v3082_v28 }
0x1087   :  { %2881 = vmatprep.subr.bf16.mxu0 %v3208_v0 }
0x108a   :  { %2882 = vmatpush3.bf16.msra.mxu0 %v3083_v30 }
0x108b   :  { %2883 = vmatprep.subr.bf16.mxu0 %v3208_v0 }
0x108e   :  { %2884 = vmatpush3.bf16.msra.mxu0 %v3084_v40 }
0x108f   :  { %2885 = vmatprep.subr.bf16.mxu0 %v3208_v0 }
0x1092   :  { %2886 = vmatpush3.bf16.msra.mxu0 %v3085_v41 }
0x1093   :  { %2887 = vmatprep.subr.bf16.mxu0 %v3208_v0 }
0x1096   :  { %2888 = vmatpush3.bf16.msra.mxu0 %v3086_v44 }
0x1097   :  { %2889 = vmatprep.subr.bf16.mxu0 %v3208_v0 }
0x109a   :  { %2890 = vmatpush3.bf16.msra.mxu0 %v3087_v48 }
0x109b   :  { %2891 = vmatprep.subr.bf16.mxu0 %v3208_v0 }
0x109e   :  { %2892 = vmatpush3.bf16.msra.mxu0 %v3088_v50 }
0x109f   :  { %2917 = vmatprep.subr.bf16.mxu0 %v3208_v0 }
0x1154   :  { %v1481_v58 = vpop.f32.mrb[24].mxu0 }
0x1155   :  { %v1482_v59 = vadd.f32 %v3558_v57, %v1481_v58  ;;  %v2855_v15 = vpop.f32.mrb[25].mxu0 }
0x1156   :  { %v1484_v60 = vpop.f32.mrb[26].mxu0 }
0x1157   :  { %v1487_v61 = vmul.f32 0.5, %v1482_v59  ;;  %3157 = vtanh.f32 %v1482_v59  ;;  %v2856_v42 = vpop.f32.mrb[27].mxu0 }
0x1159   :  { %3159 = vtanh.f32 %v1487_v61 }
0x1161   :  { %v3158_v62 = vpop.eup %3157 }
0x1162   :  { %1496 = vrot.lane.b32.xlu1 %v3158_v62, %s3212_s10 }
0x1163   :  { %v3160_v63 = vpop.eup %3159 }
0x1164   :  { %v1489_v1 = vmul.f32 0.5, %v3160_v63 }
0x1166   :  { %v1490_v2 = vadd.f32 0.5, %v1489_v1 }
0x1168   :  { %1494 = vrot.lane.b32.xlu1 %v1490_v2, %s3206_s25  ;;  %1492 = vrot.lane.b32.xlu0 %v1490_v2, %s3211_s9  ;;  %v1498_v21 = vmul.f32 %v1490_v2, %v3488_v34  ;;  %v1137_v34 = vsel %vm278_vm3, %v3519_v13, 0.0 }
0x11d4   :  { %v1497_v19 = vpop.permute.xlu1 %1496 }
0x11da   :  { %v1493_v20 = vpop.permute.xlu0 %1492  ;;  %v1495_v10 = vpop.permute.xlu1 %1494 }
0x11db   :  { %v1499_v4 = vmul.f32 %v1497_v19, %v1493_v20 }
0x11dd   :  { %v3572_v6 = vadd.f32 %v1499_v4, %v1498_v21  ;;  %v3096_v4 = vld [vmem:[#allocation2 + $0x138] sm:$0xff]  }
0x11df   :  { %3161 = vtanh.f32 %v3572_v6 }
0x11e9   :  { %v3162_v47 = vpop.eup %3161 }
0x11ea   :  { %v1502_v12 = vmul.f32 %v3162_v47, %v1495_v10  ;;  %v3098_v47 = vld [vmem:[#allocation2 + $0x48] sm:$0xff]   ;;  %v3099_v10 = vld [vmem:[#allocation2 + $0x50] sm:$0xff]  }
0x11ec   :  { %v3578_v17 = vsel %vm278_vm3, %v1502_v12, 0.0  ;;  %v3100_v12 = vld [vmem:[#allocation2 + $0x58] sm:$0xff]  }
0x11ed   :  { %1504 = vrot.lane.b32.xlu0 %v3578_v17, %s3212_s10 }
0x125f   :  { %v1505_v18 = vpop.permute.xlu0 %1504 }
0x1260   :  { %v1506_v39 = vadd.f32 %v1505_v18, %v1137_v34  ;;  %v3101_v34 = vld [vmem:[#allocation2 + $0x60] sm:$0xff]   ;;  %v3102_v18 = vld [vmem:[#allocation2 + $0x68] sm:$0xff]  }
0x1262   :  { %v1507_v23 = vpack.c.bf16 %v1506_v39, %v1506_v39  ;;  %v3103_v39 = vld [vmem:[#allocation2 + $0x70] sm:$0xff]  }
0x1264   :  { %2874 = vmatmul.mubr.bf16.vlgmr.msra.gmra.mrb[24].mxu1 %v1507_v23 }
0x1265   :  { %2913 = vmatprep.mubr.msk.bf16.mxu1 %vm3209_vm0, %v3208_v0  ;;  %2898 = vmatpush3.bf16.msra.mxu1 %v3089_v3 }
0x1266   :  { %2899 = vmatprep.subr.bf16.mxu1 %v3208_v0 }
0x1269   :  { %2900 = vmatpush3.bf16.msra.mxu1 %v3090_v5 }
0x126a   :  { %2901 = vmatprep.subr.bf16.mxu1 %v3208_v0 }
0x1337   :  { %v1611_v13 = vpop.f32.mrb[24].mxu1 }
0x1338   :  { %v1612_v31 = vadd.f32 %v3592_v29, %v1611_v13  ;;  %v2875_v32 = vpop.f32.mrb[25].mxu1 }
0x1339   :  { %v1614_v33 = vpop.f32.mrb[26].mxu1 }
0x133a   :  { %v1617_v35 = vmul.f32 0.5, %v1612_v31  ;;  %3163 = vtanh.f32 %v1612_v31  ;;  %v2876_v37 = vpop.f32.mrb[27].mxu1  ;;  %v3104_v31 = vld [vmem:[#allocation2 + $0x78] sm:$0xff]  }
0x133c   :  { %3165 = vtanh.f32 %v1617_v35 }
0x1344   :  { %v3164_v43 = vpop.eup %3163 }
0x1345   :  { %1626 = vrot.lane.b32.xlu0 %v3164_v43, %s3212_s10 }
0x1346   :  { %v3166_v45 = vpop.eup %3165 }
0x1347   :  { %v1619_v46 = vmul.f32 0.5, %v3166_v45 }
0x1349   :  { %v1620_v49 = vadd.f32 0.5, %v1619_v46 }
0x134b   :  { %1622 = vrot.lane.b32.xlu1 %v1620_v49, %s3211_s9  ;;  %v1628_v24 = vmul.f32 %v1620_v49, %v3516_v7 }
0x134f   :  { %1624 = vrot.lane.b32.xlu1 %v1620_v49, %s3206_s25 }
0x13b7   :  { %v1627_v51 = vpop.permute.xlu0 %1626 }
0x13bd   :  { %v1623_v52 = vpop.permute.xlu1 %1622 }
0x13be   :  { %v1629_v53 = vmul.f32 %v1627_v51, %v1623_v52  ;;  %v3105_v52 = vld [vmem:[#allocation2 + $0x80] sm:$0xff]  }
0x13c0   :  { %v3605_v54 = vadd.f32 %v1629_v53, %v1628_v24  ;;  %v3106_v24 = vld [vmem:[#allocation2 + $0x88] sm:$0xff]   ;;  %v3108_v53 = vld [vmem:[#allocation2 + $0x98] sm:$0xff]  }
0x13c1   :  { %v1625_v56 = vpop.permute.xlu1 %1624 }
0x13c2   :  { %3167 = vtanh.f32 %v3605_v54 }
0x13cc   :  { %v3168_v55 = vpop.eup %3167 }
0x13cd   :  { %v3608_v58 = vmul.f32 %v3168_v55, %v1625_v56  ;;  %v3109_v55 = vld [vmem:[#allocation2 + $0xa0] sm:$0xff]   ;;  %v3110_v56 = vld [vmem:[#allocation2 + $0xa8] sm:$0xff]  }
0x13cf   :  { %v2381_v59 = vpack.c.bf16 %v3608_v58, %v3608_v58  ;;  %v1633_v5 = vsel %vm278_vm3, %v3608_v58, 0.0 }
0x13d1   :  { %2894 = vmatmul.mubr.msk.bf16.vlgmr.msra.gmra.mrb[28].mxu0 %vm3433_vm4, %v2381_v59  ;;  %v3111_v59 = vld [vmem:[#allocation2 + $0xb0] sm:$0xff]  }
0x13d2   :  { %2933 = vmatprep.mubr.msk.bf16.mxu0 %vm3209_vm0, %v3208_v0  ;;  %2918 = vmatpush3.bf16.msra.mxu0 %v3097_v8  ;;  %v3117_v8 = vld [vmem:[#allocation2 + $0xe0] sm:$0xff]  }
0x13d3   :  { %2919 = vmatprep.subr.bf16.mxu0 %v3208_v0 }
0x13d6   :  { %2920 = vmatpush3.bf16.msra.mxu0 %v3098_v47 }
0x13d7   :  { %2921 = vmatprep.subr.bf16.mxu0 %v3208_v0 }
0x13da   :  { %2922 = vmatpush3.bf16.msra.mxu0 %v3099_v10  ;;  %v3118_v10 = vld [vmem:[#allocation2 + $0xe8] sm:$0xff]  }
0x13db   :  { %2923 = vmatprep.subr.bf16.mxu0 %v3208_v0 }
0x13de   :  { %2924 = vmatpush3.bf16.msra.mxu0 %v3100_v12 }
0x13df   :  { %2925 = vmatprep.subr.bf16.mxu0 %v3208_v0 }
0x13e2   :  { %2926 = vmatpush3.bf16.msra.mxu0 %v3101_v34  ;;  %v3119_v34 = vld [vmem:[#allocation2 + $0xf0] sm:$0xff]  }
0x13e3   :  { %2927 = vmatprep.subr.bf16.mxu0 %v3208_v0 }
0x13e6   :  { %2928 = vmatpush3.bf16.msra.mxu0 %v3102_v18 }
0x13e7   :  { %2929 = vmatprep.subr.bf16.mxu0 %v3208_v0 }
0x13ea   :  { %2930 = vmatpush3.bf16.msra.mxu0 %v3103_v39  ;;  %v3120_v39 = vld [vmem:[#allocation2 + $0xf8] sm:$0xff]  }
0x13eb   :  { %2931 = vmatprep.subr.bf16.mxu0 %v3208_v0 }
0x13ee   :  { %2932 = vmatpush3.bf16.msra.mxu0 %v3104_v31 }
0x13ef   :  { %2957 = vmatprep.subr.bf16.mxu0 %v3208_v0 }
0x14a4   :  { %v1738_v15 = vpop.f32.mrb[28].mxu0 }
0x14a5   :  { %v1739_v7 = vadd.f32 %v3446_v27, %v1738_v15  ;;  %v2895_v60 = vpop.f32.mrb[29].mxu0  ;;  %v3091_v27 = vld [vmem:[#allocation2 + $0x110] sm:$0xff]  }
0x14a6   :  { %v1741_v61 = vpop.f32.mrb[30].mxu0  ;;  %2902 = vmatpush3.bf16.msra.mxu1 %v3091_v27 }
0x14a7   :  { %2383 = vst [vmem:[%s3686_s4 + $0x10] sm:$0xff] %v1739_v7  ;;  %1746 = vmax.xlane.f32.xlu0 %v1739_v7  ;;  %v2896_v42 = vpop.f32.mrb[31].mxu0  ;;  %2903 = vmatprep.subr.bf16.mxu1 %v3208_v0 }
0x14aa   :  { %2904 = vmatpush3.bf16.msra.mxu1 %v3092_v9 }
0x14ab   :  { %2905 = vmatprep.subr.bf16.mxu1 %v3208_v0 }
0x14ae   :  { %2906 = vmatpush3.bf16.msra.mxu1 %v3093_v11  ;;  %v3113_v11 = vld [vmem:[#allocation2 + $0xc0] sm:$0xff]  }
0x14af   :  { %2907 = vmatprep.subr.bf16.mxu1 %v3208_v0 }
0x14b2   :  { %2908 = vmatpush3.bf16.msra.mxu1 %v3094_v14  ;;  %v3114_v14 = vld [vmem:[#allocation2 + $0xc8] sm:$0xff]  }
0x14b3   :  { %2909 = vmatprep.subr.bf16.mxu1 %v3208_v0 }
0x14b6   :  { %2910 = vmatpush3.bf16.msra.mxu1 %v3095_v16 }
0x14b7   :  { %2911 = vmatprep.subr.bf16.mxu1 %v3208_v0 }
0x14ba   :  { %2912 = vmatpush3.bf16.msra.mxu1 %v3096_v4  ;;  %v3116_v4 = vld [vmem:[#allocation2 + $0xd8] sm:$0xff]  }
0x14bb   :  { %2937 = vmatprep.subr.bf16.mxu1 %v3208_v0 }
0x1534   :  { %v1747_v62 = vpop.xlane.xlu0 %1746 }
0x1535   :  { %vm1748_vm13 = vcmp.eq.f32.partialorder %v1739_v7, %v1747_v62  ;;  %v3112_v62 = vld [vmem:[#allocation2 + $0xb8] sm:$0xff]  }
0x1536   :  { %v1749_v63 = vsel %vm1748_vm13, %v3317_v36, 128 }
0x1537   :  { %v1751_v1 = vshra.s32 %v1749_v63, 16  ;;  %v1750_v22 = vand.u32 65535, %v1749_v63 }
0x1539   :  { %v1753_v2 = vcvt.s32.f32 %v1751_v1  ;;  %v1752_v20 = vcvt.s32.f32 %v1750_v22  ;;  %v3115_v22 = vld [vmem:[#allocation2 + $0xd0] sm:$0xff]  }
0x153b   :  { %1754 = vmin.xlane.f32.xlu1 %v1753_v2 }
0x15c8   :  { %v1755_v19 = vpop.xlane.xlu1 %1754 }
0x15c9   :  { %vm1756_vm14 = vcmp.eq.f32.partialorder %v1753_v2, %v1755_v19  ;;  %v1761_v23 = vcvt.f32.s32 %v1755_v19 }
0x15ca   :  { %v1757_v21 = vsel %vm1756_vm14, %v1752_v20, inf }
0x15cb   :  { %1758 = vmin.xlane.f32.xlu0 %v1757_v21  ;;  %v1762_v28 = vshll.u32 %v1761_v23, 16 }
0x1658   :  { %v1759_v26 = vpop.xlane.xlu0 %1758 }
0x1659   :  { %v1760_v13 = vcvt.f32.s32 %v1759_v26 }
0x165b   :  { %v1763_v30 = vadd.s32 %v1762_v28, %v1760_v13 }
0x165d   :  { %vm1764_vm15 = vcmp.eq.s32.totalorder %v3317_v36, %v1763_v30 }
0x165e   :  { %vm2393_vm1 = vmpackc.low %vm1764_vm15, %vm1764_vm15 }
0x165f   :  { %2914 = vmatmul.mubr.msk.bf16.vlgmr.msra.gmra.mrb[28].mxu1 %vm2393_vm1, %v3210_v38 }
0x1660   :  { %2953 = vmatprep.mubr.msk.bf16.mxu1 %vm3209_vm0, %v3208_v0  ;;  %2938 = vmatpush3.bf16.msra.mxu1 %v3105_v52 }
0x1661   :  { %2939 = vmatprep.subr.bf16.mxu1 %v3208_v0 }
0x1664   :  { %2940 = vmatpush3.bf16.msra.mxu1 %v3106_v24 }
0x1665   :  { %2941 = vmatprep.subr.bf16.mxu1 %v3208_v0 }
0x1732   :  { %v1866_v32 = vpop.f32.mrb[28].mxu1 }
0x1733   :  { %v1872_v33 = vadd.f32 %v1866_v32, %v3578_v17  ;;  %v2915_v35 = vpop.f32.mrb[29].mxu1 }
0x1734   :  { %v1869_v37 = vpop.f32.mrb[30].mxu1 }
0x1735   :  { %v1873_v40 = vpack.c.bf16 %v1872_v33, %v1872_v33  ;;  %v2916_v41 = vpop.f32.mrb[31].mxu1 }
0x1737   :  { %2934 = vmatmul.mubr.bf16.vlgmr.msra.gmra.mrb[32].mxu0 %v1873_v40 }
0x1738   :  { %2973 = vmatprep.mubr.msk.bf16.mxu0 %vm3209_vm0, %v3208_v0  ;;  %2958 = vmatpush3.bf16.msra.mxu0 %v3113_v11 }
0x1739   :  { %2959 = vmatprep.subr.bf16.mxu0 %v3208_v0 }
0x173c   :  { %2960 = vmatpush3.bf16.msra.mxu0 %v3114_v14 }
0x173d   :  { %2961 = vmatprep.subr.bf16.mxu0 %v3208_v0 }
0x1740   :  { %2962 = vmatpush3.bf16.msra.mxu0 %v3115_v22 }
0x1741   :  { %2963 = vmatprep.subr.bf16.mxu0 %v3208_v0 }
0x1744   :  { %2964 = vmatpush3.bf16.msra.mxu0 %v3116_v4 }
0x1745   :  { %2965 = vmatprep.subr.bf16.mxu0 %v3208_v0 }
0x1748   :  { %2966 = vmatpush3.bf16.msra.mxu0 %v3117_v8 }
0x1749   :  { %2967 = vmatprep.subr.bf16.mxu0 %v3208_v0 }
0x174c   :  { %2968 = vmatpush3.bf16.msra.mxu0 %v3118_v10 }
0x174d   :  { %2969 = vmatprep.subr.bf16.mxu0 %v3208_v0 }
0x1750   :  { %2970 = vmatpush3.bf16.msra.mxu0 %v3119_v34 }
0x1751   :  { %2971 = vmatprep.subr.bf16.mxu0 %v3208_v0 }
0x1754   :  { %2972 = vmatpush3.bf16.msra.mxu0 %v3120_v39 }
0x180a   :  { %v1977_v43 = vpop.f32.mrb[32].mxu0 }
0x180b   :  { %v1978_v38 = vadd.f32 %v3558_v57, %v1977_v43  ;;  %v2935_v44 = vpop.f32.mrb[33].mxu0  ;;  %v3107_v57 = vld [vmem:[#allocation2 + $0x90] sm:$0xff]  }
0x180c   :  { %v1980_v45 = vpop.f32.mrb[34].mxu0  ;;  %2942 = vmatpush3.bf16.msra.mxu1 %v3107_v57 }
0x180d   :  { %v1983_v46 = vmul.f32 0.5, %v1978_v38  ;;  %3169 = vtanh.f32 %v1978_v38  ;;  %v2936_v48 = vpop.f32.mrb[35].mxu0  ;;  %2943 = vmatprep.subr.bf16.mxu1 %v3208_v0 }
0x180f   :  { %3171 = vtanh.f32 %v1983_v46 }
0x1810   :  { %2944 = vmatpush3.bf16.msra.mxu1 %v3108_v53 }
0x1811   :  { %2945 = vmatprep.subr.bf16.mxu1 %v3208_v0 }
0x1814   :  { %2946 = vmatpush3.bf16.msra.mxu1 %v3109_v55 }
0x1815   :  { %2947 = vmatprep.subr.bf16.mxu1 %v3208_v0 }
0x1817   :  { %v3170_v49 = vpop.eup %3169 }
0x1818   :  { %1992 = vrot.lane.b32.xlu1 %v3170_v49, %s3212_s10  ;;  %2948 = vmatpush3.bf16.msra.mxu1 %v3110_v56 }
0x1819   :  { %v3172_v17 = vpop.eup %3171  ;;  %2949 = vmatprep.subr.bf16.mxu1 %v3208_v0 }
0x181a   :  { %v1985_v50 = vmul.f32 0.5, %v3172_v17 }
0x181c   :  { %v1986_v51 = vadd.f32 0.5, %v1985_v50  ;;  %2950 = vmatpush3.bf16.msra.mxu1 %v3111_v59 }
0x181d   :  { %2951 = vmatprep.subr.bf16.mxu1 %v3208_v0  ;;  %v2413_v0 = vld [vmem:[%s3685_s3 + $0x3] ss:$0 sm:$0xff] }
0x181e   :  { %1990 = vrot.lane.b32.xlu1 %v1986_v51, %s3206_s25  ;;  %1988 = vrot.lane.b32.xlu0 %v1986_v51, %s3211_s9  ;;  %v1994_v60 = vmul.f32 %v1986_v51, %v3572_v6 }
0x1820   :  { %2952 = vmatpush3.bf16.msra.mxu1 %v3112_v62 }
0x188a   :  { %v1993_v15 = vpop.permute.xlu1 %1992 }
0x1890   :  { %v1989_v7 = vpop.permute.xlu0 %1988  ;;  %v1991_v1 = vpop.permute.xlu1 %1990 }
0x1891   :  { %v1995_v61 = vmul.f32 %v1993_v15, %v1989_v7 }
0x1893   :  { %v1996_v42 = vadd.f32 %v1995_v61, %v1994_v60 }
0x1895   :  { %3173 = vtanh.f32 %v1996_v42 }
0x189f   :  { %v3174_v63 = vpop.eup %3173 }
0x18a0   :  { %v1998_v2 = vmul.f32 %v3174_v63, %v1991_v1 }
0x18a2   :  { %v1999_v3 = vsel %vm278_vm3, %v1998_v2, 0.0 }
0x18a3   :  { %2000 = vrot.lane.b32.xlu0 %v1999_v3, %s3212_s10 }
0x1915   :  { %v2001_v27 = vpop.permute.xlu0 %2000 }
0x1916   :  { %v2002_v9 = vadd.f32 %v2001_v27, %v1633_v5 }
0x1918   :  { %v2003_v6 = vpack.c.bf16 %v2002_v9, %v2002_v9 }
0x191a   :  { %2954 = vmatmul.mubr.bf16.vlgmr.msra.gmra.mrb[32].mxu1 %v2003_v6 }
0x19ed   :  { %v2107_v16 = vpop.f32.mrb[32].mxu1 }
0x19ee   :  { %v2108_v19 = vadd.f32 %v3592_v29, %v2107_v16  ;;  %v2955_v20 = vpop.f32.mrb[33].mxu1 }
0x19ef   :  { %v2110_v21 = vpop.f32.mrb[34].mxu1 }
0x19f0   :  { %v2113_v36 = vmul.f32 0.5, %v2108_v19  ;;  %3175 = vtanh.f32 %v2108_v19  ;;  %v2956_v58 = vpop.f32.mrb[35].mxu1 }
0x19f2   :  { %3177 = vtanh.f32 %v2113_v36 }
0x19fa   :  { %v3176_v47 = vpop.eup %3175 }
0x19fb   :  { %2122 = vrot.lane.b32.xlu0 %v3176_v47, %s3212_s10 }
0x19fc   :  { %v3178_v29 = vpop.eup %3177 }
0x19fd   :  { %v2115_v12 = vmul.f32 0.5, %v3178_v29 }
0x19ff   :  { %v2116_v18 = vadd.f32 0.5, %v2115_v12 }
0x1a01   :  { %2118 = vrot.lane.b32.xlu1 %v2116_v18, %s3211_s9  ;;  %v2124_v28 = vmul.f32 %v2116_v18, %v3605_v54 }
0x1a05   :  { %2120 = vrot.lane.b32.xlu1 %v2116_v18, %s3206_s25 }
0x1a6d   :  { %v2123_v23 = vpop.permute.xlu0 %2122 }
0x1a73   :  { %v2119_v26 = vpop.permute.xlu1 %2118 }
0x1a74   :  { %v2125_v13 = vmul.f32 %v2123_v23, %v2119_v26 }
0x1a76   :  { %v2126_v30 = vadd.f32 %v2125_v13, %v2124_v28 }
0x1a77   :  { %v2121_v32 = vpop.permute.xlu1 %2120 }
0x1a78   :  { %3179 = vtanh.f32 %v2126_v30 }
0x1a82   :  { %v3180_v31 = vpop.eup %3179 }
0x1a83   :  { %v2128_v33 = vmul.f32 %v3180_v31, %v2121_v32 }
0x1a85   :  { %v2423_v35 = vpack.c.bf16 %v2128_v33, %v2128_v33 }
0x1a87   :  { %2974 = vmatmul.mubr.msk.bf16.vlgmr.msra.gmra.mrb[36].mxu0 %vm3433_vm4, %v2423_v35 }
0x1b5a   :  { %v2234_v37 = vpop.f32.mrb[36].mxu0 }
0x1b5b   :  { %v2235_v40 = vadd.f32 %v2413_v0, %v2234_v37  ;;  %v2975_v41 = vpop.f32.mrb[37].mxu0 }
0x1b5c   :  { %v2237_v43 = vpop.f32.mrb[38].mxu0 }
0x1b5d   :  { %2425 = vst [vmem:[%s3686_s4 + $0x18] sm:$0xff] %v2235_v40  ;;  %v2976_v54 = vpop.f32.mrb[39].mxu0 }
0x1b5e   :  { %2246 = vsyncpa [#allocation3], 1 }

</bundles_post_ra>
